<compile_context>
chip_gen: v7x
topology: tpu7x:2x2x1
jax: 0.10.0
libtpu: 0.0.40
codegen_flags: <defaults>
</compile_context>

<pallas_src>
import jax
import jax.numpy as jnp
from jax.experimental import pallas as pl
from jax.experimental.pallas import tpu as pltpu

HIDDEN = 8
INPUT = 1

# Column offsets inside the packed (8, 128) parameter block (rows = hidden idx j).
_COL_WHH_R = 0        # cols  0: 8   W_hr  (H, H)
_COL_WHH_Z = 8        # cols  8:16   W_hz
_COL_WHH_N = 16       # cols 16:24   W_hn
_COL_WIH = 24         # cols 24,25,26 = W_ir, W_iz, W_in columns (input_size == 1)
_COL_BIH = 27         # cols 27,28,29 = b_ir, b_iz, b_in
_COL_BHH = 30         # cols 30,31,32 = b_hr, b_hz, b_hn
_COL_FCW = 33         # col 33 = fc.weight (H,)
_COL_FCB = 34         # col 34 = fc.bias (replicated over rows)


def gru_fc_kernel(x_ref, pp_ref, out_ref):
    """GRU recurrence + final Linear; everything resident in VMEM, all VPU.

    x_ref  : (T, B)   input sequence, batch on lanes (input_size == 1, squeezed)
    pp_ref : (8, 128) packed parameters (see _COL_* layout)
    out_ref: (1, B)   lane-dense output
    """
    T, B = x_ref.shape
    H = HIDDEN

    x = x_ref[...]                       # (T, B)
    pp = pp_ref[...]                     # (H, 128)

    def lane_b(col):                     # (H, 1) -> (H, B); hoisted (done once)
        return jnp.broadcast_to(col, (H, B))

    # hidden->hidden weight columns per gate, pre-broadcast over batch lanes.
    whr = [lane_b(pp[:, _COL_WHH_R + k:_COL_WHH_R + k + 1]) for k in range(H)]
    whz = [lane_b(pp[:, _COL_WHH_Z + k:_COL_WHH_Z + k + 1]) for k in range(H)]
    whn = [lane_b(pp[:, _COL_WHH_N + k:_COL_WHH_N + k + 1]) for k in range(H)]

    wir = lane_b(pp[:, _COL_WIH + 0:_COL_WIH + 1])
    wiz = lane_b(pp[:, _COL_WIH + 1:_COL_WIH + 2])
    win = lane_b(pp[:, _COL_WIH + 2:_COL_WIH + 3])
    bir = lane_b(pp[:, _COL_BIH + 0:_COL_BIH + 1])
    biz = lane_b(pp[:, _COL_BIH + 1:_COL_BIH + 2])
    bin_ = lane_b(pp[:, _COL_BIH + 2:_COL_BIH + 3])
    bhr = lane_b(pp[:, _COL_BHH + 0:_COL_BHH + 1])
    bhz = lane_b(pp[:, _COL_BHH + 1:_COL_BHH + 2])
    bhn = lane_b(pp[:, _COL_BHH + 2:_COL_BHH + 3])
    fcw = lane_b(pp[:, _COL_FCW:_COL_FCW + 1])
    fcb = jnp.broadcast_to(pp[0:1, _COL_FCB:_COL_FCB + 1], (1, B))

    h = jnp.zeros((H, B), jnp.float32)

    # T is small and static -> unrolled Python loop (LLO-visible).
    for t in range(T):
        x_t = jnp.broadcast_to(x[t:t + 1, :], (H, B))      # one sublane broadcast
        # input->gate terms: depend only on x, off the serial h->h chain.
        gi_r = wir * x_t + bir
        gi_z = wiz * x_t + biz
        gi_n = win * x_t + bin_

        # hidden->gate terms: 8-term VPU FMA per gate (no MXU round trip).
        gh_r, gh_z, gh_n = bhr, bhz, bhn
        for k in range(H):
            h_k = jnp.broadcast_to(h[k:k + 1, :], (H, B))
            gh_r = gh_r + whr[k] * h_k
            gh_z = gh_z + whz[k] * h_k
            gh_n = gh_n + whn[k] * h_k

        r = jax.nn.sigmoid(gi_r + gh_r)
        z = jax.nn.sigmoid(gi_z + gh_z)
        n = jnp.tanh(gi_n + r * gh_n)
        h = (1.0 - z) * n + z * h

    # Dropout(0.1) -> identity at inference time.
    # Linear(8, 1): sublane reduction of fcw * h, lane-dense (1, B) store.
    out_ref[...] = jnp.sum(fcw * h, axis=0, keepdims=True) + fcb


@jax.jit
def gru_model_forward(x, packed_params):
    """x: (B, T, 1) float32 -> (B,) float32 (matches the PyTorch forward)."""
    B, T, I = x.shape
    assert I == INPUT
    x_tb = jnp.transpose(x[..., 0])                    # (T, B): batch on lanes
    vmem = pl.BlockSpec(memory_space=pltpu.MemorySpace.VMEM)
    out = pl.pallas_call(
        gru_fc_kernel,
        out_shape=jax.ShapeDtypeStruct((1, B), jnp.float32),
        in_specs=[vmem, vmem],
        out_specs=vmem,
    )(x_tb, packed_params)
    return out[0]                                      # .squeeze() -> (B,)


def init_raw_params(key, hidden=HIDDEN, inp=INPUT):
    """PyTorch-shaped params, U(-1/sqrt(H), 1/sqrt(H)); gate order (r, z, n)."""
    k = 1.0 / jnp.sqrt(jnp.float32(hidden))
    keys = jax.random.split(key, 6)
    return {
        "w_ih": jax.random.uniform(keys[0], (3 * hidden, inp), jnp.float32, -k, k),
        "w_hh": jax.random.uniform(keys[1], (3 * hidden, hidden), jnp.float32, -k, k),
        "b_ih": jax.random.uniform(keys[2], (3 * hidden,), jnp.float32, -k, k),
        "b_hh": jax.random.uniform(keys[3], (3 * hidden,), jnp.float32, -k, k),
        "fc_w": jax.random.uniform(keys[4], (1, hidden), jnp.float32, -k, k),
        "fc_b": jax.random.uniform(keys[5], (1,), jnp.float32, -k, k),
    }


def pack_params(raw, hidden=HIDDEN):
    """Pack all parameters into a single (8, 128) f32 block (one DMA)."""
    H = hidden
    w_ih, w_hh = raw["w_ih"], raw["w_hh"]
    b_ih, b_hh = raw["b_ih"], raw["b_hh"]
    fc_w, fc_b = raw["fc_w"], raw["fc_b"]
    pp = jnp.zeros((H, 128), jnp.float32)
    pp = pp.at[:, _COL_WHH_R:_COL_WHH_R + H].set(w_hh[0:H, :])
    pp = pp.at[:, _COL_WHH_Z:_COL_WHH_Z + H].set(w_hh[H:2 * H, :])
    pp = pp.at[:, _COL_WHH_N:_COL_WHH_N + H].set(w_hh[2 * H:3 * H, :])
    pp = pp.at[:, _COL_WIH + 0].set(w_ih[0:H, 0])
    pp = pp.at[:, _COL_WIH + 1].set(w_ih[H:2 * H, 0])
    pp = pp.at[:, _COL_WIH + 2].set(w_ih[2 * H:3 * H, 0])
    pp = pp.at[:, _COL_BIH + 0].set(b_ih[0:H])
    pp = pp.at[:, _COL_BIH + 1].set(b_ih[H:2 * H])
    pp = pp.at[:, _COL_BIH + 2].set(b_ih[2 * H:3 * H])
    pp = pp.at[:, _COL_BHH + 0].set(b_hh[0:H])
    pp = pp.at[:, _COL_BHH + 1].set(b_hh[H:2 * H])
    pp = pp.at[:, _COL_BHH + 2].set(b_hh[2 * H:3 * H])
    pp = pp.at[:, _COL_FCW].set(fc_w[0, :])
    pp = pp.at[:, _COL_FCB].set(jnp.full((H,), fc_b[0]))
    return pp


def reference_forward(x, raw):
    """Pure-JAX reference with PyTorch nn.GRU semantics (gate order r, z, n)."""
    B, T, _ = x.shape
    H = HIDDEN
    w_ih, w_hh = raw["w_ih"], raw["w_hh"]
    b_ih, b_hh = raw["b_ih"], raw["b_hh"]
    h = jnp.zeros((B, H), jnp.float32)
    for t in range(T):
        x_t = x[:, t, :]                               # (B, 1)
        gi = x_t @ w_ih.T + b_ih                       # (B, 3H)
        gh = h @ w_hh.T + b_hh                         # (B, 3H)
        r = jax.nn.sigmoid(gi[:, 0:H] + gh[:, 0:H])
        z = jax.nn.sigmoid(gi[:, H:2 * H] + gh[:, H:2 * H])
        n = jnp.tanh(gi[:, 2 * H:3 * H] + r * gh[:, 2 * H:3 * H])
        h = (1.0 - z) * n + z * h
    return (h @ raw["fc_w"].T + raw["fc_b"])[:, 0]


if __name__ == "__main__":
    key = jax.random.PRNGKey(0)
    k_param, k_x = jax.random.split(key)

    B, T = 2, 8
    raw = init_raw_params(k_param)
    packed = pack_params(raw)
    x = jax.random.normal(k_x, (B, T, INPUT), jnp.float32)

    out = jax.block_until_ready(gru_model_forward(x, packed))
    ref = reference_forward(x, raw)

    assert out.shape == (B,)
    assert jnp.allclose(out, ref, atol=1e-5, rtol=1e-5), (out, ref)
    print("KERNEL_OK")
</pallas_src>

<mosaic_0001>
module attributes {stable_mosaic.version = 11 : i64} {
  func.func @gru_fc_kernel(%arg0: memref<8x2xf32, #tpu.memory_space<vmem>>, %arg1: memref<8x128xf32, #tpu.memory_space<vmem>>, %arg2: memref<1x2xf32, #tpu.memory_space<vmem>>) attributes {dimension_semantics = [], scalar_prefetch = 0 : i64, scratch_operands = 0 : i64, tpu.core_type = #tpu.core_type<tc>} {
    %c0 = arith.constant 0 : index
    %c0_0 = arith.constant 0 : index
    %0 = vector.load %arg0[%c0, %c0_0] : memref<8x2xf32, #tpu.memory_space<vmem>>, vector<8x2xf32>
    %c0_1 = arith.constant 0 : index
    %c0_2 = arith.constant 0 : index
    %1 = vector.load %arg1[%c0_1, %c0_2] : memref<8x128xf32, #tpu.memory_space<vmem>>, vector<8x128xf32>
    %2 = vector.extract_strided_slice %1 {offsets = [0, 0], sizes = [8, 1], strides = [1, 1]} : vector<8x128xf32> to vector<8x1xf32>
    %3 = vector.shape_cast %2 : vector<8x1xf32> to vector<8x1xf32>
    %4 = vector.broadcast %3 : vector<8x1xf32> to vector<8x2xf32>
    %5 = vector.extract_strided_slice %1 {offsets = [0, 1], sizes = [8, 1], strides = [1, 1]} : vector<8x128xf32> to vector<8x1xf32>
    %6 = vector.shape_cast %5 : vector<8x1xf32> to vector<8x1xf32>
    %7 = vector.broadcast %6 : vector<8x1xf32> to vector<8x2xf32>
    %8 = vector.extract_strided_slice %1 {offsets = [0, 2], sizes = [8, 1], strides = [1, 1]} : vector<8x128xf32> to vector<8x1xf32>
    %9 = vector.shape_cast %8 : vector<8x1xf32> to vector<8x1xf32>
    %10 = vector.broadcast %9 : vector<8x1xf32> to vector<8x2xf32>
    %11 = vector.extract_strided_slice %1 {offsets = [0, 3], sizes = [8, 1], strides = [1, 1]} : vector<8x128xf32> to vector<8x1xf32>
    %12 = vector.shape_cast %11 : vector<8x1xf32> to vector<8x1xf32>
    %13 = vector.broadcast %12 : vector<8x1xf32> to vector<8x2xf32>
    %14 = vector.extract_strided_slice %1 {offsets = [0, 4], sizes = [8, 1], strides = [1, 1]} : vector<8x128xf32> to vector<8x1xf32>
    %15 = vector.shape_cast %14 : vector<8x1xf32> to vector<8x1xf32>
    %16 = vector.broadcast %15 : vector<8x1xf32> to vector<8x2xf32>
    %17 = vector.extract_strided_slice %1 {offsets = [0, 5], sizes = [8, 1], strides = [1, 1]} : vector<8x128xf32> to vector<8x1xf32>
    %18 = vector.shape_cast %17 : vector<8x1xf32> to vector<8x1xf32>
    %19 = vector.broadcast %18 : vector<8x1xf32> to vector<8x2xf32>
    %20 = vector.extract_strided_slice %1 {offsets = [0, 6], sizes = [8, 1], strides = [1, 1]} : vector<8x128xf32> to vector<8x1xf32>
    %21 = vector.shape_cast %20 : vector<8x1xf32> to vector<8x1xf32>
    %22 = vector.broadcast %21 : vector<8x1xf32> to vector<8x2xf32>
    %23 = vector.extract_strided_slice %1 {offsets = [0, 7], sizes = [8, 1], strides = [1, 1]} : vector<8x128xf32> to vector<8x1xf32>
    %24 = vector.shape_cast %23 : vector<8x1xf32> to vector<8x1xf32>
    %25 = vector.broadcast %24 : vector<8x1xf32> to vector<8x2xf32>
    %26 = vector.extract_strided_slice %1 {offsets = [0, 8], sizes = [8, 1], strides = [1, 1]} : vector<8x128xf32> to vector<8x1xf32>
    %27 = vector.shape_cast %26 : vector<8x1xf32> to vector<8x1xf32>
    %28 = vector.broadcast %27 : vector<8x1xf32> to vector<8x2xf32>
    %29 = vector.extract_strided_slice %1 {offsets = [0, 9], sizes = [8, 1], strides = [1, 1]} : vector<8x128xf32> to vector<8x1xf32>
    %30 = vector.shape_cast %29 : vector<8x1xf32> to vector<8x1xf32>
    %31 = vector.broadcast %30 : vector<8x1xf32> to vector<8x2xf32>
    %32 = vector.extract_strided_slice %1 {offsets = [0, 10], sizes = [8, 1], strides = [1, 1]} : vector<8x128xf32> to vector<8x1xf32>
    %33 = vector.shape_cast %32 : vector<8x1xf32> to vector<8x1xf32>
    %34 = vector.broadcast %33 : vector<8x1xf32> to vector<8x2xf32>
    %35 = vector.extract_strided_slice %1 {offsets = [0, 11], sizes = [8, 1], strides = [1, 1]} : vector<8x128xf32> to vector<8x1xf32>
    %36 = vector.shape_cast %35 : vector<8x1xf32> to vector<8x1xf32>
    %37 = vector.broadcast %36 : vector<8x1xf32> to vector<8x2xf32>
    %38 = vector.extract_strided_slice %1 {offsets = [0, 12], sizes = [8, 1], strides = [1, 1]} : vector<8x128xf32> to vector<8x1xf32>
    %39 = vector.shape_cast %38 : vector<8x1xf32> to vector<8x1xf32>
    %40 = vector.broadcast %39 : vector<8x1xf32> to vector<8x2xf32>
    %41 = vector.extract_strided_slice %1 {offsets = [0, 13], sizes = [8, 1], strides = [1, 1]} : vector<8x128xf32> to vector<8x1xf32>
    %42 = vector.shape_cast %41 : vector<8x1xf32> to vector<8x1xf32>
    %43 = vector.broadcast %42 : vector<8x1xf32> to vector<8x2xf32>
    %44 = vector.extract_strided_slice %1 {offsets = [0, 14], sizes = [8, 1], strides = [1, 1]} : vector<8x128xf32> to vector<8x1xf32>
    %45 = vector.shape_cast %44 : vector<8x1xf32> to vector<8x1xf32>
    %46 = vector.broadcast %45 : vector<8x1xf32> to vector<8x2xf32>
    %47 = vector.extract_strided_slice %1 {offsets = [0, 15], sizes = [8, 1], strides = [1, 1]} : vector<8x128xf32> to vector<8x1xf32>
    %48 = vector.shape_cast %47 : vector<8x1xf32> to vector<8x1xf32>
    %49 = vector.broadcast %48 : vector<8x1xf32> to vector<8x2xf32>
    %50 = vector.extract_strided_slice %1 {offsets = [0, 16], sizes = [8, 1], strides = [1, 1]} : vector<8x128xf32> to vector<8x1xf32>
    %51 = vector.shape_cast %50 : vector<8x1xf32> to vector<8x1xf32>
    %52 = vector.broadcast %51 : vector<8x1xf32> to vector<8x2xf32>
    %53 = vector.extract_strided_slice %1 {offsets = [0, 17], sizes = [8, 1], strides = [1, 1]} : vector<8x128xf32> to vector<8x1xf32>
    %54 = vector.shape_cast %53 : vector<8x1xf32> to vector<8x1xf32>
    %55 = vector.broadcast %54 : vector<8x1xf32> to vector<8x2xf32>
    %56 = vector.extract_strided_slice %1 {offsets = [0, 18], sizes = [8, 1], strides = [1, 1]} : vector<8x128xf32> to vector<8x1xf32>
    %57 = vector.shape_cast %56 : vector<8x1xf32> to vector<8x1xf32>
    %58 = vector.broadcast %57 : vector<8x1xf32> to vector<8x2xf32>
    %59 = vector.extract_strided_slice %1 {offsets = [0, 19], sizes = [8, 1], strides = [1, 1]} : vector<8x128xf32> to vector<8x1xf32>
    %60 = vector.shape_cast %59 : vector<8x1xf32> to vector<8x1xf32>
    %61 = vector.broadcast %60 : vector<8x1xf32> to vector<8x2xf32>
    %62 = vector.extract_strided_slice %1 {offsets = [0, 20], sizes = [8, 1], strides = [1, 1]} : vector<8x128xf32> to vector<8x1xf32>
    %63 = vector.shape_cast %62 : vector<8x1xf32> to vector<8x1xf32>
    %64 = vector.broadcast %63 : vector<8x1xf32> to vector<8x2xf32>
    %65 = vector.extract_strided_slice %1 {offsets = [0, 21], sizes = [8, 1], strides = [1, 1]} : vector<8x128xf32> to vector<8x1xf32>
    %66 = vector.shape_cast %65 : vector<8x1xf32> to vector<8x1xf32>
    %67 = vector.broadcast %66 : vector<8x1xf32> to vector<8x2xf32>
    %68 = vector.extract_strided_slice %1 {offsets = [0, 22], sizes = [8, 1], strides = [1, 1]} : vector<8x128xf32> to vector<8x1xf32>
    %69 = vector.shape_cast %68 : vector<8x1xf32> to vector<8x1xf32>
    %70 = vector.broadcast %69 : vector<8x1xf32> to vector<8x2xf32>
    %71 = vector.extract_strided_slice %1 {offsets = [0, 23], sizes = [8, 1], strides = [1, 1]} : vector<8x128xf32> to vector<8x1xf32>
    %72 = vector.shape_cast %71 : vector<8x1xf32> to vector<8x1xf32>
    %73 = vector.broadcast %72 : vector<8x1xf32> to vector<8x2xf32>
    %74 = vector.extract_strided_slice %1 {offsets = [0, 24], sizes = [8, 1], strides = [1, 1]} : vector<8x128xf32> to vector<8x1xf32>
    %75 = vector.shape_cast %74 : vector<8x1xf32> to vector<8x1xf32>
    %76 = vector.broadcast %75 : vector<8x1xf32> to vector<8x2xf32>
    %77 = vector.extract_strided_slice %1 {offsets = [0, 25], sizes = [8, 1], strides = [1, 1]} : vector<8x128xf32> to vector<8x1xf32>
    %78 = vector.shape_cast %77 : vector<8x1xf32> to vector<8x1xf32>
    %79 = vector.broadcast %78 : vector<8x1xf32> to vector<8x2xf32>
    %80 = vector.extract_strided_slice %1 {offsets = [0, 26], sizes = [8, 1], strides = [1, 1]} : vector<8x128xf32> to vector<8x1xf32>
    %81 = vector.shape_cast %80 : vector<8x1xf32> to vector<8x1xf32>
    %82 = vector.broadcast %81 : vector<8x1xf32> to vector<8x2xf32>
    %83 = vector.extract_strided_slice %1 {offsets = [0, 27], sizes = [8, 1], strides = [1, 1]} : vector<8x128xf32> to vector<8x1xf32>
    %84 = vector.shape_cast %83 : vector<8x1xf32> to vector<8x1xf32>
    %85 = vector.broadcast %84 : vector<8x1xf32> to vector<8x2xf32>
    %86 = vector.extract_strided_slice %1 {offsets = [0, 28], sizes = [8, 1], strides = [1, 1]} : vector<8x128xf32> to vector<8x1xf32>
    %87 = vector.shape_cast %86 : vector<8x1xf32> to vector<8x1xf32>
    %88 = vector.broadcast %87 : vector<8x1xf32> to vector<8x2xf32>
    %89 = vector.extract_strided_slice %1 {offsets = [0, 29], sizes = [8, 1], strides = [1, 1]} : vector<8x128xf32> to vector<8x1xf32>
    %90 = vector.shape_cast %89 : vector<8x1xf32> to vector<8x1xf32>
    %91 = vector.broadcast %90 : vector<8x1xf32> to vector<8x2xf32>
    %92 = vector.extract_strided_slice %1 {offsets = [0, 30], sizes = [8, 1], strides = [1, 1]} : vector<8x128xf32> to vector<8x1xf32>
    %93 = vector.shape_cast %92 : vector<8x1xf32> to vector<8x1xf32>
    %94 = vector.broadcast %93 : vector<8x1xf32> to vector<8x2xf32>
    %95 = vector.extract_strided_slice %1 {offsets = [0, 31], sizes = [8, 1], strides = [1, 1]} : vector<8x128xf32> to vector<8x1xf32>
    %96 = vector.shape_cast %95 : vector<8x1xf32> to vector<8x1xf32>
    %97 = vector.broadcast %96 : vector<8x1xf32> to vector<8x2xf32>
    %98 = vector.extract_strided_slice %1 {offsets = [0, 32], sizes = [8, 1], strides = [1, 1]} : vector<8x128xf32> to vector<8x1xf32>
    %99 = vector.shape_cast %98 : vector<8x1xf32> to vector<8x1xf32>
    %100 = vector.broadcast %99 : vector<8x1xf32> to vector<8x2xf32>
    %101 = vector.extract_strided_slice %1 {offsets = [0, 33], sizes = [8, 1], strides = [1, 1]} : vector<8x128xf32> to vector<8x1xf32>
    %102 = vector.shape_cast %101 : vector<8x1xf32> to vector<8x1xf32>
    %103 = vector.broadcast %102 : vector<8x1xf32> to vector<8x2xf32>
    %104 = vector.extract_strided_slice %1 {offsets = [0, 34], sizes = [1, 1], strides = [1, 1]} : vector<8x128xf32> to vector<1x1xf32>
    %105 = vector.shape_cast %104 : vector<1x1xf32> to vector<1x1xf32>
    %106 = vector.broadcast %105 : vector<1x1xf32> to vector<1x2xf32>
    %cst = arith.constant 0.000000e+00 : f32
    %107 = vector.broadcast %cst : f32 to vector<8x2xf32>
    %108 = vector.extract_strided_slice %0 {offsets = [0, 0], sizes = [1, 2], strides = [1, 1]} : vector<8x2xf32> to vector<1x2xf32>
    %109 = vector.shape_cast %108 : vector<1x2xf32> to vector<1x2xf32>
    %110 = vector.broadcast %109 : vector<1x2xf32> to vector<8x2xf32>
    %111 = arith.mulf %76, %110 : vector<8x2xf32>
    %112 = arith.addf %111, %85 : vector<8x2xf32>
    %113 = arith.mulf %79, %110 : vector<8x2xf32>
    %114 = arith.addf %113, %88 : vector<8x2xf32>
    %115 = arith.mulf %82, %110 : vector<8x2xf32>
    %116 = arith.addf %115, %91 : vector<8x2xf32>
    %117 = vector.extract_strided_slice %107 {offsets = [0, 0], sizes = [1, 2], strides = [1, 1]} : vector<8x2xf32> to vector<1x2xf32>
    %118 = vector.shape_cast %117 : vector<1x2xf32> to vector<1x2xf32>
    %119 = vector.broadcast %118 : vector<1x2xf32> to vector<8x2xf32>
    %120 = arith.mulf %4, %119 : vector<8x2xf32>
    %121 = arith.addf %94, %120 : vector<8x2xf32>
    %122 = arith.mulf %28, %119 : vector<8x2xf32>
    %123 = arith.addf %97, %122 : vector<8x2xf32>
    %124 = arith.mulf %52, %119 : vector<8x2xf32>
    %125 = arith.addf %100, %124 : vector<8x2xf32>
    %126 = vector.extract_strided_slice %107 {offsets = [1, 0], sizes = [1, 2], strides = [1, 1]} : vector<8x2xf32> to vector<1x2xf32>
    %127 = vector.shape_cast %126 : vector<1x2xf32> to vector<1x2xf32>
    %128 = vector.broadcast %127 : vector<1x2xf32> to vector<8x2xf32>
    %129 = arith.mulf %7, %128 : vector<8x2xf32>
    %130 = arith.addf %121, %129 : vector<8x2xf32>
    %131 = arith.mulf %31, %128 : vector<8x2xf32>
    %132 = arith.addf %123, %131 : vector<8x2xf32>
    %133 = arith.mulf %55, %128 : vector<8x2xf32>
    %134 = arith.addf %125, %133 : vector<8x2xf32>
    %135 = vector.extract_strided_slice %107 {offsets = [2, 0], sizes = [1, 2], strides = [1, 1]} : vector<8x2xf32> to vector<1x2xf32>
    %136 = vector.shape_cast %135 : vector<1x2xf32> to vector<1x2xf32>
    %137 = vector.broadcast %136 : vector<1x2xf32> to vector<8x2xf32>
    %138 = arith.mulf %10, %137 : vector<8x2xf32>
    %139 = arith.addf %130, %138 : vector<8x2xf32>
    %140 = arith.mulf %34, %137 : vector<8x2xf32>
    %141 = arith.addf %132, %140 : vector<8x2xf32>
    %142 = arith.mulf %58, %137 : vector<8x2xf32>
    %143 = arith.addf %134, %142 : vector<8x2xf32>
    %144 = vector.extract_strided_slice %107 {offsets = [3, 0], sizes = [1, 2], strides = [1, 1]} : vector<8x2xf32> to vector<1x2xf32>
    %145 = vector.shape_cast %144 : vector<1x2xf32> to vector<1x2xf32>
    %146 = vector.broadcast %145 : vector<1x2xf32> to vector<8x2xf32>
    %147 = arith.mulf %13, %146 : vector<8x2xf32>
    %148 = arith.addf %139, %147 : vector<8x2xf32>
    %149 = arith.mulf %37, %146 : vector<8x2xf32>
    %150 = arith.addf %141, %149 : vector<8x2xf32>
    %151 = arith.mulf %61, %146 : vector<8x2xf32>
    %152 = arith.addf %143, %151 : vector<8x2xf32>
    %153 = vector.extract_strided_slice %107 {offsets = [4, 0], sizes = [1, 2], strides = [1, 1]} : vector<8x2xf32> to vector<1x2xf32>
    %154 = vector.shape_cast %153 : vector<1x2xf32> to vector<1x2xf32>
    %155 = vector.broadcast %154 : vector<1x2xf32> to vector<8x2xf32>
    %156 = arith.mulf %16, %155 : vector<8x2xf32>
    %157 = arith.addf %148, %156 : vector<8x2xf32>
    %158 = arith.mulf %40, %155 : vector<8x2xf32>
    %159 = arith.addf %150, %158 : vector<8x2xf32>
    %160 = arith.mulf %64, %155 : vector<8x2xf32>
    %161 = arith.addf %152, %160 : vector<8x2xf32>
    %162 = vector.extract_strided_slice %107 {offsets = [5, 0], sizes = [1, 2], strides = [1, 1]} : vector<8x2xf32> to vector<1x2xf32>
    %163 = vector.shape_cast %162 : vector<1x2xf32> to vector<1x2xf32>
    %164 = vector.broadcast %163 : vector<1x2xf32> to vector<8x2xf32>
    %165 = arith.mulf %19, %164 : vector<8x2xf32>
    %166 = arith.addf %157, %165 : vector<8x2xf32>
    %167 = arith.mulf %43, %164 : vector<8x2xf32>
    %168 = arith.addf %159, %167 : vector<8x2xf32>
    %169 = arith.mulf %67, %164 : vector<8x2xf32>
    %170 = arith.addf %161, %169 : vector<8x2xf32>
    %171 = vector.extract_strided_slice %107 {offsets = [6, 0], sizes = [1, 2], strides = [1, 1]} : vector<8x2xf32> to vector<1x2xf32>
    %172 = vector.shape_cast %171 : vector<1x2xf32> to vector<1x2xf32>
    %173 = vector.broadcast %172 : vector<1x2xf32> to vector<8x2xf32>
    %174 = arith.mulf %22, %173 : vector<8x2xf32>
    %175 = arith.addf %166, %174 : vector<8x2xf32>
    %176 = arith.mulf %46, %173 : vector<8x2xf32>
    %177 = arith.addf %168, %176 : vector<8x2xf32>
    %178 = arith.mulf %70, %173 : vector<8x2xf32>
    %179 = arith.addf %170, %178 : vector<8x2xf32>
    %180 = vector.extract_strided_slice %107 {offsets = [7, 0], sizes = [1, 2], strides = [1, 1]} : vector<8x2xf32> to vector<1x2xf32>
    %181 = vector.shape_cast %180 : vector<1x2xf32> to vector<1x2xf32>
    %182 = vector.broadcast %181 : vector<1x2xf32> to vector<8x2xf32>
    %183 = arith.mulf %25, %182 : vector<8x2xf32>
    %184 = arith.addf %175, %183 : vector<8x2xf32>
    %185 = arith.mulf %49, %182 : vector<8x2xf32>
    %186 = arith.addf %177, %185 : vector<8x2xf32>
    %187 = arith.mulf %73, %182 : vector<8x2xf32>
    %188 = arith.addf %179, %187 : vector<8x2xf32>
    %189 = arith.addf %112, %184 : vector<8x2xf32>
    %190 = arith.negf %189 : vector<8x2xf32>
    %191 = math.exp %190 : vector<8x2xf32>
    %cst_3 = arith.constant 1.000000e+00 : f32
    %192 = vector.broadcast %cst_3 : f32 to vector<8x2xf32>
    %193 = arith.addf %192, %191 : vector<8x2xf32>
    %194 = arith.divf %192, %193 : vector<8x2xf32>
    %195 = arith.addf %114, %186 : vector<8x2xf32>
    %196 = arith.negf %195 : vector<8x2xf32>
    %197 = math.exp %196 : vector<8x2xf32>
    %cst_4 = arith.constant 1.000000e+00 : f32
    %198 = vector.broadcast %cst_4 : f32 to vector<8x2xf32>
    %199 = arith.addf %198, %197 : vector<8x2xf32>
    %200 = arith.divf %198, %199 : vector<8x2xf32>
    %201 = arith.mulf %194, %188 : vector<8x2xf32>
    %202 = arith.addf %116, %201 : vector<8x2xf32>
    %203 = math.tanh %202 : vector<8x2xf32>
    %cst_5 = arith.constant 1.000000e+00 : f32
    %204 = vector.broadcast %cst_5 : f32 to vector<8x2xf32>
    %205 = arith.subf %204, %200 : vector<8x2xf32>
    %206 = arith.mulf %205, %203 : vector<8x2xf32>
    %207 = arith.mulf %200, %107 : vector<8x2xf32>
    %208 = arith.addf %206, %207 : vector<8x2xf32>
    %209 = vector.extract_strided_slice %0 {offsets = [1, 0], sizes = [1, 2], strides = [1, 1]} : vector<8x2xf32> to vector<1x2xf32>
    %210 = vector.shape_cast %209 : vector<1x2xf32> to vector<1x2xf32>
    %211 = vector.broadcast %210 : vector<1x2xf32> to vector<8x2xf32>
    %212 = arith.mulf %76, %211 : vector<8x2xf32>
    %213 = arith.addf %212, %85 : vector<8x2xf32>
    %214 = arith.mulf %79, %211 : vector<8x2xf32>
    %215 = arith.addf %214, %88 : vector<8x2xf32>
    %216 = arith.mulf %82, %211 : vector<8x2xf32>
    %217 = arith.addf %216, %91 : vector<8x2xf32>
    %218 = vector.extract_strided_slice %208 {offsets = [0, 0], sizes = [1, 2], strides = [1, 1]} : vector<8x2xf32> to vector<1x2xf32>
    %219 = vector.shape_cast %218 : vector<1x2xf32> to vector<1x2xf32>
    %220 = vector.broadcast %219 : vector<1x2xf32> to vector<8x2xf32>
    %221 = arith.mulf %4, %220 : vector<8x2xf32>
    %222 = arith.addf %94, %221 : vector<8x2xf32>
    %223 = arith.mulf %28, %220 : vector<8x2xf32>
    %224 = arith.addf %97, %223 : vector<8x2xf32>
    %225 = arith.mulf %52, %220 : vector<8x2xf32>
    %226 = arith.addf %100, %225 : vector<8x2xf32>
    %227 = vector.extract_strided_slice %208 {offsets = [1, 0], sizes = [1, 2], strides = [1, 1]} : vector<8x2xf32> to vector<1x2xf32>
    %228 = vector.shape_cast %227 : vector<1x2xf32> to vector<1x2xf32>
    %229 = vector.broadcast %228 : vector<1x2xf32> to vector<8x2xf32>
    %230 = arith.mulf %7, %229 : vector<8x2xf32>
    %231 = arith.addf %222, %230 : vector<8x2xf32>
    %232 = arith.mulf %31, %229 : vector<8x2xf32>
    %233 = arith.addf %224, %232 : vector<8x2xf32>
    %234 = arith.mulf %55, %229 : vector<8x2xf32>
    %235 = arith.addf %226, %234 : vector<8x2xf32>
    %236 = vector.extract_strided_slice %208 {offsets = [2, 0], sizes = [1, 2], strides = [1, 1]} : vector<8x2xf32> to vector<1x2xf32>
    %237 = vector.shape_cast %236 : vector<1x2xf32> to vector<1x2xf32>
    %238 = vector.broadcast %237 : vector<1x2xf32> to vector<8x2xf32>
    %239 = arith.mulf %10, %238 : vector<8x2xf32>
    %240 = arith.addf %231, %239 : vector<8x2xf32>
    %241 = arith.mulf %34, %238 : vector<8x2xf32>
    %242 = arith.addf %233, %241 : vector<8x2xf32>
    %243 = arith.mulf %58, %238 : vector<8x2xf32>
    %244 = arith.addf %235, %243 : vector<8x2xf32>
    %245 = vector.extract_strided_slice %208 {offsets = [3, 0], sizes = [1, 2], strides = [1, 1]} : vector<8x2xf32> to vector<1x2xf32>
    %246 = vector.shape_cast %245 : vector<1x2xf32> to vector<1x2xf32>
    %247 = vector.broadcast %246 : vector<1x2xf32> to vector<8x2xf32>
    %248 = arith.mulf %13, %247 : vector<8x2xf32>
    %249 = arith.addf %240, %248 : vector<8x2xf32>
    %250 = arith.mulf %37, %247 : vector<8x2xf32>
    %251 = arith.addf %242, %250 : vector<8x2xf32>
    %252 = arith.mulf %61, %247 : vector<8x2xf32>
    %253 = arith.addf %244, %252 : vector<8x2xf32>
    %254 = vector.extract_strided_slice %208 {offsets = [4, 0], sizes = [1, 2], strides = [1, 1]} : vector<8x2xf32> to vector<1x2xf32>
    %255 = vector.shape_cast %254 : vector<1x2xf32> to vector<1x2xf32>
    %256 = vector.broadcast %255 : vector<1x2xf32> to vector<8x2xf32>
    %257 = arith.mulf %16, %256 : vector<8x2xf32>
    %258 = arith.addf %249, %257 : vector<8x2xf32>
    %259 = arith.mulf %40, %256 : vector<8x2xf32>
    %260 = arith.addf %251, %259 : vector<8x2xf32>
    %261 = arith.mulf %64, %256 : vector<8x2xf32>
    %262 = arith.addf %253, %261 : vector<8x2xf32>
    %263 = vector.extract_strided_slice %208 {offsets = [5, 0], sizes = [1, 2], strides = [1, 1]} : vector<8x2xf32> to vector<1x2xf32>
    %264 = vector.shape_cast %263 : vector<1x2xf32> to vector<1x2xf32>
    %265 = vector.broadcast %264 : vector<1x2xf32> to vector<8x2xf32>
    %266 = arith.mulf %19, %265 : vector<8x2xf32>
    %267 = arith.addf %258, %266 : vector<8x2xf32>
    %268 = arith.mulf %43, %265 : vector<8x2xf32>
    %269 = arith.addf %260, %268 : vector<8x2xf32>
    %270 = arith.mulf %67, %265 : vector<8x2xf32>
    %271 = arith.addf %262, %270 : vector<8x2xf32>
    %272 = vector.extract_strided_slice %208 {offsets = [6, 0], sizes = [1, 2], strides = [1, 1]} : vector<8x2xf32> to vector<1x2xf32>
    %273 = vector.shape_cast %272 : vector<1x2xf32> to vector<1x2xf32>
    %274 = vector.broadcast %273 : vector<1x2xf32> to vector<8x2xf32>
    %275 = arith.mulf %22, %274 : vector<8x2xf32>
    %276 = arith.addf %267, %275 : vector<8x2xf32>
    %277 = arith.mulf %46, %274 : vector<8x2xf32>
    %278 = arith.addf %269, %277 : vector<8x2xf32>
    %279 = arith.mulf %70, %274 : vector<8x2xf32>
    %280 = arith.addf %271, %279 : vector<8x2xf32>
    %281 = vector.extract_strided_slice %208 {offsets = [7, 0], sizes = [1, 2], strides = [1, 1]} : vector<8x2xf32> to vector<1x2xf32>
    %282 = vector.shape_cast %281 : vector<1x2xf32> to vector<1x2xf32>
    %283 = vector.broadcast %282 : vector<1x2xf32> to vector<8x2xf32>
    %284 = arith.mulf %25, %283 : vector<8x2xf32>
    %285 = arith.addf %276, %284 : vector<8x2xf32>
    %286 = arith.mulf %49, %283 : vector<8x2xf32>
    %287 = arith.addf %278, %286 : vector<8x2xf32>
    %288 = arith.mulf %73, %283 : vector<8x2xf32>
    %289 = arith.addf %280, %288 : vector<8x2xf32>
    %290 = arith.addf %213, %285 : vector<8x2xf32>
    %291 = arith.negf %290 : vector<8x2xf32>
    %292 = math.exp %291 : vector<8x2xf32>
    %cst_6 = arith.constant 1.000000e+00 : f32
    %293 = vector.broadcast %cst_6 : f32 to vector<8x2xf32>
    %294 = arith.addf %293, %292 : vector<8x2xf32>
    %295 = arith.divf %293, %294 : vector<8x2xf32>
    %296 = arith.addf %215, %287 : vector<8x2xf32>
    %297 = arith.negf %296 : vector<8x2xf32>
    %298 = math.exp %297 : vector<8x2xf32>
    %cst_7 = arith.constant 1.000000e+00 : f32
    %299 = vector.broadcast %cst_7 : f32 to vector<8x2xf32>
    %300 = arith.addf %299, %298 : vector<8x2xf32>
    %301 = arith.divf %299, %300 : vector<8x2xf32>
    %302 = arith.mulf %295, %289 : vector<8x2xf32>
    %303 = arith.addf %217, %302 : vector<8x2xf32>
    %304 = math.tanh %303 : vector<8x2xf32>
    %cst_8 = arith.constant 1.000000e+00 : f32
    %305 = vector.broadcast %cst_8 : f32 to vector<8x2xf32>
    %306 = arith.subf %305, %301 : vector<8x2xf32>
    %307 = arith.mulf %306, %304 : vector<8x2xf32>
    %308 = arith.mulf %301, %208 : vector<8x2xf32>
    %309 = arith.addf %307, %308 : vector<8x2xf32>
    %310 = vector.extract_strided_slice %0 {offsets = [2, 0], sizes = [1, 2], strides = [1, 1]} : vector<8x2xf32> to vector<1x2xf32>
    %311 = vector.shape_cast %310 : vector<1x2xf32> to vector<1x2xf32>
    %312 = vector.broadcast %311 : vector<1x2xf32> to vector<8x2xf32>
    %313 = arith.mulf %76, %312 : vector<8x2xf32>
    %314 = arith.addf %313, %85 : vector<8x2xf32>
    %315 = arith.mulf %79, %312 : vector<8x2xf32>
    %316 = arith.addf %315, %88 : vector<8x2xf32>
    %317 = arith.mulf %82, %312 : vector<8x2xf32>
    %318 = arith.addf %317, %91 : vector<8x2xf32>
    %319 = vector.extract_strided_slice %309 {offsets = [0, 0], sizes = [1, 2], strides = [1, 1]} : vector<8x2xf32> to vector<1x2xf32>
    %320 = vector.shape_cast %319 : vector<1x2xf32> to vector<1x2xf32>
    %321 = vector.broadcast %320 : vector<1x2xf32> to vector<8x2xf32>
    %322 = arith.mulf %4, %321 : vector<8x2xf32>
    %323 = arith.addf %94, %322 : vector<8x2xf32>
    %324 = arith.mulf %28, %321 : vector<8x2xf32>
    %325 = arith.addf %97, %324 : vector<8x2xf32>
    %326 = arith.mulf %52, %321 : vector<8x2xf32>
    %327 = arith.addf %100, %326 : vector<8x2xf32>
    %328 = vector.extract_strided_slice %309 {offsets = [1, 0], sizes = [1, 2], strides = [1, 1]} : vector<8x2xf32> to vector<1x2xf32>
    %329 = vector.shape_cast %328 : vector<1x2xf32> to vector<1x2xf32>
    %330 = vector.broadcast %329 : vector<1x2xf32> to vector<8x2xf32>
    %331 = arith.mulf %7, %330 : vector<8x2xf32>
    %332 = arith.addf %323, %331 : vector<8x2xf32>
    %333 = arith.mulf %31, %330 : vector<8x2xf32>
    %334 = arith.addf %325, %333 : vector<8x2xf32>
    %335 = arith.mulf %55, %330 : vector<8x2xf32>
    %336 = arith.addf %327, %335 : vector<8x2xf32>
    %337 = vector.extract_strided_slice %309 {offsets = [2, 0], sizes = [1, 2], strides = [1, 1]} : vector<8x2xf32> to vector<1x2xf32>
    %338 = vector.shape_cast %337 : vector<1x2xf32> to vector<1x2xf32>
    %339 = vector.broadcast %338 : vector<1x2xf32> to vector<8x2xf32>
    %340 = arith.mulf %10, %339 : vector<8x2xf32>
    %341 = arith.addf %332, %340 : vector<8x2xf32>
    %342 = arith.mulf %34, %339 : vector<8x2xf32>
    %343 = arith.addf %334, %342 : vector<8x2xf32>
    %344 = arith.mulf %58, %339 : vector<8x2xf32>
    %345 = arith.addf %336, %344 : vector<8x2xf32>
    %346 = vector.extract_strided_slice %309 {offsets = [3, 0], sizes = [1, 2], strides = [1, 1]} : vector<8x2xf32> to vector<1x2xf32>
    %347 = vector.shape_cast %346 : vector<1x2xf32> to vector<1x2xf32>
    %348 = vector.broadcast %347 : vector<1x2xf32> to vector<8x2xf32>
    %349 = arith.mulf %13, %348 : vector<8x2xf32>
    %350 = arith.addf %341, %349 : vector<8x2xf32>
    %351 = arith.mulf %37, %348 : vector<8x2xf32>
    %352 = arith.addf %343, %351 : vector<8x2xf32>
    %353 = arith.mulf %61, %348 : vector<8x2xf32>
    %354 = arith.addf %345, %353 : vector<8x2xf32>
    %355 = vector.extract_strided_slice %309 {offsets = [4, 0], sizes = [1, 2], strides = [1, 1]} : vector<8x2xf32> to vector<1x2xf32>
    %356 = vector.shape_cast %355 : vector<1x2xf32> to vector<1x2xf32>
    %357 = vector.broadcast %356 : vector<1x2xf32> to vector<8x2xf32>
    %358 = arith.mulf %16, %357 : vector<8x2xf32>
    %359 = arith.addf %350, %358 : vector<8x2xf32>
    %360 = arith.mulf %40, %357 : vector<8x2xf32>
    %361 = arith.addf %352, %360 : vector<8x2xf32>
    %362 = arith.mulf %64, %357 : vector<8x2xf32>
    %363 = arith.addf %354, %362 : vector<8x2xf32>
    %364 = vector.extract_strided_slice %309 {offsets = [5, 0], sizes = [1, 2], strides = [1, 1]} : vector<8x2xf32> to vector<1x2xf32>
    %365 = vector.shape_cast %364 : vector<1x2xf32> to vector<1x2xf32>
    %366 = vector.broadcast %365 : vector<1x2xf32> to vector<8x2xf32>
    %367 = arith.mulf %19, %366 : vector<8x2xf32>
    %368 = arith.addf %359, %367 : vector<8x2xf32>
    %369 = arith.mulf %43, %366 : vector<8x2xf32>
    %370 = arith.addf %361, %369 : vector<8x2xf32>
    %371 = arith.mulf %67, %366 : vector<8x2xf32>
    %372 = arith.addf %363, %371 : vector<8x2xf32>
    %373 = vector.extract_strided_slice %309 {offsets = [6, 0], sizes = [1, 2], strides = [1, 1]} : vector<8x2xf32> to vector<1x2xf32>
    %374 = vector.shape_cast %373 : vector<1x2xf32> to vector<1x2xf32>
    %375 = vector.broadcast %374 : vector<1x2xf32> to vector<8x2xf32>
    %376 = arith.mulf %22, %375 : vector<8x2xf32>
    %377 = arith.addf %368, %376 : vector<8x2xf32>
    %378 = arith.mulf %46, %375 : vector<8x2xf32>
    %379 = arith.addf %370, %378 : vector<8x2xf32>
    %380 = arith.mulf %70, %375 : vector<8x2xf32>
    %381 = arith.addf %372, %380 : vector<8x2xf32>
    %382 = vector.extract_strided_slice %309 {offsets = [7, 0], sizes = [1, 2], strides = [1, 1]} : vector<8x2xf32> to vector<1x2xf32>
    %383 = vector.shape_cast %382 : vector<1x2xf32> to vector<1x2xf32>
    %384 = vector.broadcast %383 : vector<1x2xf32> to vector<8x2xf32>
    %385 = arith.mulf %25, %384 : vector<8x2xf32>
    %386 = arith.addf %377, %385 : vector<8x2xf32>
    %387 = arith.mulf %49, %384 : vector<8x2xf32>
    %388 = arith.addf %379, %387 : vector<8x2xf32>
    %389 = arith.mulf %73, %384 : vector<8x2xf32>
    %390 = arith.addf %381, %389 : vector<8x2xf32>
    %391 = arith.addf %314, %386 : vector<8x2xf32>
    %392 = arith.negf %391 : vector<8x2xf32>
    %393 = math.exp %392 : vector<8x2xf32>
    %cst_9 = arith.constant 1.000000e+00 : f32
    %394 = vector.broadcast %cst_9 : f32 to vector<8x2xf32>
    %395 = arith.addf %394, %393 : vector<8x2xf32>
    %396 = arith.divf %394, %395 : vector<8x2xf32>
    %397 = arith.addf %316, %388 : vector<8x2xf32>
    %398 = arith.negf %397 : vector<8x2xf32>
    %399 = math.exp %398 : vector<8x2xf32>
    %cst_10 = arith.constant 1.000000e+00 : f32
    %400 = vector.broadcast %cst_10 : f32 to vector<8x2xf32>
    %401 = arith.addf %400, %399 : vector<8x2xf32>
    %402 = arith.divf %400, %401 : vector<8x2xf32>
    %403 = arith.mulf %396, %390 : vector<8x2xf32>
    %404 = arith.addf %318, %403 : vector<8x2xf32>
    %405 = math.tanh %404 : vector<8x2xf32>
    %cst_11 = arith.constant 1.000000e+00 : f32
    %406 = vector.broadcast %cst_11 : f32 to vector<8x2xf32>
    %407 = arith.subf %406, %402 : vector<8x2xf32>
    %408 = arith.mulf %407, %405 : vector<8x2xf32>
    %409 = arith.mulf %402, %309 : vector<8x2xf32>
    %410 = arith.addf %408, %409 : vector<8x2xf32>
    %411 = vector.extract_strided_slice %0 {offsets = [3, 0], sizes = [1, 2], strides = [1, 1]} : vector<8x2xf32> to vector<1x2xf32>
    %412 = vector.shape_cast %411 : vector<1x2xf32> to vector<1x2xf32>
    %413 = vector.broadcast %412 : vector<1x2xf32> to vector<8x2xf32>
    %414 = arith.mulf %76, %413 : vector<8x2xf32>
    %415 = arith.addf %414, %85 : vector<8x2xf32>
    %416 = arith.mulf %79, %413 : vector<8x2xf32>
    %417 = arith.addf %416, %88 : vector<8x2xf32>
    %418 = arith.mulf %82, %413 : vector<8x2xf32>
    %419 = arith.addf %418, %91 : vector<8x2xf32>
    %420 = vector.extract_strided_slice %410 {offsets = [0, 0], sizes = [1, 2], strides = [1, 1]} : vector<8x2xf32> to vector<1x2xf32>
    %421 = vector.shape_cast %420 : vector<1x2xf32> to vector<1x2xf32>
    %422 = vector.broadcast %421 : vector<1x2xf32> to vector<8x2xf32>
    %423 = arith.mulf %4, %422 : vector<8x2xf32>
    %424 = arith.addf %94, %423 : vector<8x2xf32>
    %425 = arith.mulf %28, %422 : vector<8x2xf32>
    %426 = arith.addf %97, %425 : vector<8x2xf32>
    %427 = arith.mulf %52, %422 : vector<8x2xf32>
    %428 = arith.addf %100, %427 : vector<8x2xf32>
    %429 = vector.extract_strided_slice %410 {offsets = [1, 0], sizes = [1, 2], strides = [1, 1]} : vector<8x2xf32> to vector<1x2xf32>
    %430 = vector.shape_cast %429 : vector<1x2xf32> to vector<1x2xf32>
    %431 = vector.broadcast %430 : vector<1x2xf32> to vector<8x2xf32>
    %432 = arith.mulf %7, %431 : vector<8x2xf32>
    %433 = arith.addf %424, %432 : vector<8x2xf32>
    %434 = arith.mulf %31, %431 : vector<8x2xf32>
    %435 = arith.addf %426, %434 : vector<8x2xf32>
    %436 = arith.mulf %55, %431 : vector<8x2xf32>
    %437 = arith.addf %428, %436 : vector<8x2xf32>
    %438 = vector.extract_strided_slice %410 {offsets = [2, 0], sizes = [1, 2], strides = [1, 1]} : vector<8x2xf32> to vector<1x2xf32>
    %439 = vector.shape_cast %438 : vector<1x2xf32> to vector<1x2xf32>
    %440 = vector.broadcast %439 : vector<1x2xf32> to vector<8x2xf32>
    %441 = arith.mulf %10, %440 : vector<8x2xf32>
    %442 = arith.addf %433, %441 : vector<8x2xf32>
    %443 = arith.mulf %34, %440 : vector<8x2xf32>
    %444 = arith.addf %435, %443 : vector<8x2xf32>
    %445 = arith.mulf %58, %440 : vector<8x2xf32>
    %446 = arith.addf %437, %445 : vector<8x2xf32>
    %447 = vector.extract_strided_slice %410 {offsets = [3, 0], sizes = [1, 2], strides = [1, 1]} : vector<8x2xf32> to vector<1x2xf32>
    %448 = vector.shape_cast %447 : vector<1x2xf32> to vector<1x2xf32>
    %449 = vector.broadcast %448 : vector<1x2xf32> to vector<8x2xf32>
    %450 = arith.mulf %13, %449 : vector<8x2xf32>
    %451 = arith.addf %442, %450 : vector<8x2xf32>
    %452 = arith.mulf %37, %449 : vector<8x2xf32>
    %453 = arith.addf %444, %452 : vector<8x2xf32>
    %454 = arith.mulf %61, %449 : vector<8x2xf32>
    %455 = arith.addf %446, %454 : vector<8x2xf32>
    %456 = vector.extract_strided_slice %410 {offsets = [4, 0], sizes = [1, 2], strides = [1, 1]} : vector<8x2xf32> to vector<1x2xf32>
    %457 = vector.shape_cast %456 : vector<1x2xf32> to vector<1x2xf32>
    %458 = vector.broadcast %457 : vector<1x2xf32> to vector<8x2xf32>
    %459 = arith.mulf %16, %458 : vector<8x2xf32>
    %460 = arith.addf %451, %459 : vector<8x2xf32>
    %461 = arith.mulf %40, %458 : vector<8x2xf32>
    %462 = arith.addf %453, %461 : vector<8x2xf32>
    %463 = arith.mulf %64, %458 : vector<8x2xf32>
    %464 = arith.addf %455, %463 : vector<8x2xf32>
    %465 = vector.extract_strided_slice %410 {offsets = [5, 0], sizes = [1, 2], strides = [1, 1]} : vector<8x2xf32> to vector<1x2xf32>
    %466 = vector.shape_cast %465 : vector<1x2xf32> to vector<1x2xf32>
    %467 = vector.broadcast %466 : vector<1x2xf32> to vector<8x2xf32>
    %468 = arith.mulf %19, %467 : vector<8x2xf32>
    %469 = arith.addf %460, %468 : vector<8x2xf32>
    %470 = arith.mulf %43, %467 : vector<8x2xf32>
    %471 = arith.addf %462, %470 : vector<8x2xf32>
    %472 = arith.mulf %67, %467 : vector<8x2xf32>
    %473 = arith.addf %464, %472 : vector<8x2xf32>
    %474 = vector.extract_strided_slice %410 {offsets = [6, 0], sizes = [1, 2], strides = [1, 1]} : vector<8x2xf32> to vector<1x2xf32>
    %475 = vector.shape_cast %474 : vector<1x2xf32> to vector<1x2xf32>
    %476 = vector.broadcast %475 : vector<1x2xf32> to vector<8x2xf32>
    %477 = arith.mulf %22, %476 : vector<8x2xf32>
    %478 = arith.addf %469, %477 : vector<8x2xf32>
    %479 = arith.mulf %46, %476 : vector<8x2xf32>
    %480 = arith.addf %471, %479 : vector<8x2xf32>
    %481 = arith.mulf %70, %476 : vector<8x2xf32>
    %482 = arith.addf %473, %481 : vector<8x2xf32>
    %483 = vector.extract_strided_slice %410 {offsets = [7, 0], sizes = [1, 2], strides = [1, 1]} : vector<8x2xf32> to vector<1x2xf32>
    %484 = vector.shape_cast %483 : vector<1x2xf32> to vector<1x2xf32>
    %485 = vector.broadcast %484 : vector<1x2xf32> to vector<8x2xf32>
    %486 = arith.mulf %25, %485 : vector<8x2xf32>
    %487 = arith.addf %478, %486 : vector<8x2xf32>
    %488 = arith.mulf %49, %485 : vector<8x2xf32>
    %489 = arith.addf %480, %488 : vector<8x2xf32>
    %490 = arith.mulf %73, %485 : vector<8x2xf32>
    %491 = arith.addf %482, %490 : vector<8x2xf32>
    %492 = arith.addf %415, %487 : vector<8x2xf32>
    %493 = arith.negf %492 : vector<8x2xf32>
    %494 = math.exp %493 : vector<8x2xf32>
    %cst_12 = arith.constant 1.000000e+00 : f32
    %495 = vector.broadcast %cst_12 : f32 to vector<8x2xf32>
    %496 = arith.addf %495, %494 : vector<8x2xf32>
    %497 = arith.divf %495, %496 : vector<8x2xf32>
    %498 = arith.addf %417, %489 : vector<8x2xf32>
    %499 = arith.negf %498 : vector<8x2xf32>
    %500 = math.exp %499 : vector<8x2xf32>
    %cst_13 = arith.constant 1.000000e+00 : f32
    %501 = vector.broadcast %cst_13 : f32 to vector<8x2xf32>
    %502 = arith.addf %501, %500 : vector<8x2xf32>
    %503 = arith.divf %501, %502 : vector<8x2xf32>
    %504 = arith.mulf %497, %491 : vector<8x2xf32>
    %505 = arith.addf %419, %504 : vector<8x2xf32>
    %506 = math.tanh %505 : vector<8x2xf32>
    %cst_14 = arith.constant 1.000000e+00 : f32
    %507 = vector.broadcast %cst_14 : f32 to vector<8x2xf32>
    %508 = arith.subf %507, %503 : vector<8x2xf32>
    %509 = arith.mulf %508, %506 : vector<8x2xf32>
    %510 = arith.mulf %503, %410 : vector<8x2xf32>
    %511 = arith.addf %509, %510 : vector<8x2xf32>
    %512 = vector.extract_strided_slice %0 {offsets = [4, 0], sizes = [1, 2], strides = [1, 1]} : vector<8x2xf32> to vector<1x2xf32>
    %513 = vector.shape_cast %512 : vector<1x2xf32> to vector<1x2xf32>
    %514 = vector.broadcast %513 : vector<1x2xf32> to vector<8x2xf32>
    %515 = arith.mulf %76, %514 : vector<8x2xf32>
    %516 = arith.addf %515, %85 : vector<8x2xf32>
    %517 = arith.mulf %79, %514 : vector<8x2xf32>
    %518 = arith.addf %517, %88 : vector<8x2xf32>
    %519 = arith.mulf %82, %514 : vector<8x2xf32>
    %520 = arith.addf %519, %91 : vector<8x2xf32>
    %521 = vector.extract_strided_slice %511 {offsets = [0, 0], sizes = [1, 2], strides = [1, 1]} : vector<8x2xf32> to vector<1x2xf32>
    %522 = vector.shape_cast %521 : vector<1x2xf32> to vector<1x2xf32>
    %523 = vector.broadcast %522 : vector<1x2xf32> to vector<8x2xf32>
    %524 = arith.mulf %4, %523 : vector<8x2xf32>
    %525 = arith.addf %94, %524 : vector<8x2xf32>
    %526 = arith.mulf %28, %523 : vector<8x2xf32>
    %527 = arith.addf %97, %526 : vector<8x2xf32>
    %528 = arith.mulf %52, %523 : vector<8x2xf32>
    %529 = arith.addf %100, %528 : vector<8x2xf32>
    %530 = vector.extract_strided_slice %511 {offsets = [1, 0], sizes = [1, 2], strides = [1, 1]} : vector<8x2xf32> to vector<1x2xf32>
    %531 = vector.shape_cast %530 : vector<1x2xf32> to vector<1x2xf32>
    %532 = vector.broadcast %531 : vector<1x2xf32> to vector<8x2xf32>
    %533 = arith.mulf %7, %532 : vector<8x2xf32>
    %534 = arith.addf %525, %533 : vector<8x2xf32>
    %535 = arith.mulf %31, %532 : vector<8x2xf32>
    %536 = arith.addf %527, %535 : vector<8x2xf32>
    %537 = arith.mulf %55, %532 : vector<8x2xf32>
    %538 = arith.addf %529, %537 : vector<8x2xf32>
    %539 = vector.extract_strided_slice %511 {offsets = [2, 0], sizes = [1, 2], strides = [1, 1]} : vector<8x2xf32> to vector<1x2xf32>
    %540 = vector.shape_cast %539 : vector<1x2xf32> to vector<1x2xf32>
    %541 = vector.broadcast %540 : vector<1x2xf32> to vector<8x2xf32>
    %542 = arith.mulf %10, %541 : vector<8x2xf32>
    %543 = arith.addf %534, %542 : vector<8x2xf32>
    %544 = arith.mulf %34, %541 : vector<8x2xf32>
    %545 = arith.addf %536, %544 : vector<8x2xf32>
    %546 = arith.mulf %58, %541 : vector<8x2xf32>
    %547 = arith.addf %538, %546 : vector<8x2xf32>
    %548 = vector.extract_strided_slice %511 {offsets = [3, 0], sizes = [1, 2], strides = [1, 1]} : vector<8x2xf32> to vector<1x2xf32>
    %549 = vector.shape_cast %548 : vector<1x2xf32> to vector<1x2xf32>
    %550 = vector.broadcast %549 : vector<1x2xf32> to vector<8x2xf32>
    %551 = arith.mulf %13, %550 : vector<8x2xf32>
    %552 = arith.addf %543, %551 : vector<8x2xf32>
    %553 = arith.mulf %37, %550 : vector<8x2xf32>
    %554 = arith.addf %545, %553 : vector<8x2xf32>
    %555 = arith.mulf %61, %550 : vector<8x2xf32>
    %556 = arith.addf %547, %555 : vector<8x2xf32>
    %557 = vector.extract_strided_slice %511 {offsets = [4, 0], sizes = [1, 2], strides = [1, 1]} : vector<8x2xf32> to vector<1x2xf32>
    %558 = vector.shape_cast %557 : vector<1x2xf32> to vector<1x2xf32>
    %559 = vector.broadcast %558 : vector<1x2xf32> to vector<8x2xf32>
    %560 = arith.mulf %16, %559 : vector<8x2xf32>
    %561 = arith.addf %552, %560 : vector<8x2xf32>
    %562 = arith.mulf %40, %559 : vector<8x2xf32>
    %563 = arith.addf %554, %562 : vector<8x2xf32>
    %564 = arith.mulf %64, %559 : vector<8x2xf32>
    %565 = arith.addf %556, %564 : vector<8x2xf32>
    %566 = vector.extract_strided_slice %511 {offsets = [5, 0], sizes = [1, 2], strides = [1, 1]} : vector<8x2xf32> to vector<1x2xf32>
    %567 = vector.shape_cast %566 : vector<1x2xf32> to vector<1x2xf32>
    %568 = vector.broadcast %567 : vector<1x2xf32> to vector<8x2xf32>
    %569 = arith.mulf %19, %568 : vector<8x2xf32>
    %570 = arith.addf %561, %569 : vector<8x2xf32>
    %571 = arith.mulf %43, %568 : vector<8x2xf32>
    %572 = arith.addf %563, %571 : vector<8x2xf32>
    %573 = arith.mulf %67, %568 : vector<8x2xf32>
    %574 = arith.addf %565, %573 : vector<8x2xf32>
    %575 = vector.extract_strided_slice %511 {offsets = [6, 0], sizes = [1, 2], strides = [1, 1]} : vector<8x2xf32> to vector<1x2xf32>
    %576 = vector.shape_cast %575 : vector<1x2xf32> to vector<1x2xf32>
    %577 = vector.broadcast %576 : vector<1x2xf32> to vector<8x2xf32>
    %578 = arith.mulf %22, %577 : vector<8x2xf32>
    %579 = arith.addf %570, %578 : vector<8x2xf32>
    %580 = arith.mulf %46, %577 : vector<8x2xf32>
    %581 = arith.addf %572, %580 : vector<8x2xf32>
    %582 = arith.mulf %70, %577 : vector<8x2xf32>
    %583 = arith.addf %574, %582 : vector<8x2xf32>
    %584 = vector.extract_strided_slice %511 {offsets = [7, 0], sizes = [1, 2], strides = [1, 1]} : vector<8x2xf32> to vector<1x2xf32>
    %585 = vector.shape_cast %584 : vector<1x2xf32> to vector<1x2xf32>
    %586 = vector.broadcast %585 : vector<1x2xf32> to vector<8x2xf32>
    %587 = arith.mulf %25, %586 : vector<8x2xf32>
    %588 = arith.addf %579, %587 : vector<8x2xf32>
    %589 = arith.mulf %49, %586 : vector<8x2xf32>
    %590 = arith.addf %581, %589 : vector<8x2xf32>
    %591 = arith.mulf %73, %586 : vector<8x2xf32>
    %592 = arith.addf %583, %591 : vector<8x2xf32>
    %593 = arith.addf %516, %588 : vector<8x2xf32>
    %594 = arith.negf %593 : vector<8x2xf32>
    %595 = math.exp %594 : vector<8x2xf32>
    %cst_15 = arith.constant 1.000000e+00 : f32
    %596 = vector.broadcast %cst_15 : f32 to vector<8x2xf32>
    %597 = arith.addf %596, %595 : vector<8x2xf32>
    %598 = arith.divf %596, %597 : vector<8x2xf32>
    %599 = arith.addf %518, %590 : vector<8x2xf32>
    %600 = arith.negf %599 : vector<8x2xf32>
    %601 = math.exp %600 : vector<8x2xf32>
    %cst_16 = arith.constant 1.000000e+00 : f32
    %602 = vector.broadcast %cst_16 : f32 to vector<8x2xf32>
    %603 = arith.addf %602, %601 : vector<8x2xf32>
    %604 = arith.divf %602, %603 : vector<8x2xf32>
    %605 = arith.mulf %598, %592 : vector<8x2xf32>
    %606 = arith.addf %520, %605 : vector<8x2xf32>
    %607 = math.tanh %606 : vector<8x2xf32>
    %cst_17 = arith.constant 1.000000e+00 : f32
    %608 = vector.broadcast %cst_17 : f32 to vector<8x2xf32>
    %609 = arith.subf %608, %604 : vector<8x2xf32>
    %610 = arith.mulf %609, %607 : vector<8x2xf32>
    %611 = arith.mulf %604, %511 : vector<8x2xf32>
    %612 = arith.addf %610, %611 : vector<8x2xf32>
    %613 = vector.extract_strided_slice %0 {offsets = [5, 0], sizes = [1, 2], strides = [1, 1]} : vector<8x2xf32> to vector<1x2xf32>
    %614 = vector.shape_cast %613 : vector<1x2xf32> to vector<1x2xf32>
    %615 = vector.broadcast %614 : vector<1x2xf32> to vector<8x2xf32>
    %616 = arith.mulf %76, %615 : vector<8x2xf32>
    %617 = arith.addf %616, %85 : vector<8x2xf32>
    %618 = arith.mulf %79, %615 : vector<8x2xf32>
    %619 = arith.addf %618, %88 : vector<8x2xf32>
    %620 = arith.mulf %82, %615 : vector<8x2xf32>
    %621 = arith.addf %620, %91 : vector<8x2xf32>
    %622 = vector.extract_strided_slice %612 {offsets = [0, 0], sizes = [1, 2], strides = [1, 1]} : vector<8x2xf32> to vector<1x2xf32>
    %623 = vector.shape_cast %622 : vector<1x2xf32> to vector<1x2xf32>
    %624 = vector.broadcast %623 : vector<1x2xf32> to vector<8x2xf32>
    %625 = arith.mulf %4, %624 : vector<8x2xf32>
    %626 = arith.addf %94, %625 : vector<8x2xf32>
    %627 = arith.mulf %28, %624 : vector<8x2xf32>
    %628 = arith.addf %97, %627 : vector<8x2xf32>
    %629 = arith.mulf %52, %624 : vector<8x2xf32>
    %630 = arith.addf %100, %629 : vector<8x2xf32>
    %631 = vector.extract_strided_slice %612 {offsets = [1, 0], sizes = [1, 2], strides = [1, 1]} : vector<8x2xf32> to vector<1x2xf32>
    %632 = vector.shape_cast %631 : vector<1x2xf32> to vector<1x2xf32>
    %633 = vector.broadcast %632 : vector<1x2xf32> to vector<8x2xf32>
    %634 = arith.mulf %7, %633 : vector<8x2xf32>
    %635 = arith.addf %626, %634 : vector<8x2xf32>
    %636 = arith.mulf %31, %633 : vector<8x2xf32>
    %637 = arith.addf %628, %636 : vector<8x2xf32>
    %638 = arith.mulf %55, %633 : vector<8x2xf32>
    %639 = arith.addf %630, %638 : vector<8x2xf32>
    %640 = vector.extract_strided_slice %612 {offsets = [2, 0], sizes = [1, 2], strides = [1, 1]} : vector<8x2xf32> to vector<1x2xf32>
    %641 = vector.shape_cast %640 : vector<1x2xf32> to vector<1x2xf32>
    %642 = vector.broadcast %641 : vector<1x2xf32> to vector<8x2xf32>
    %643 = arith.mulf %10, %642 : vector<8x2xf32>
    %644 = arith.addf %635, %643 : vector<8x2xf32>
    %645 = arith.mulf %34, %642 : vector<8x2xf32>
    %646 = arith.addf %637, %645 : vector<8x2xf32>
    %647 = arith.mulf %58, %642 : vector<8x2xf32>
    %648 = arith.addf %639, %647 : vector<8x2xf32>
    %649 = vector.extract_strided_slice %612 {offsets = [3, 0], sizes = [1, 2], strides = [1, 1]} : vector<8x2xf32> to vector<1x2xf32>
    %650 = vector.shape_cast %649 : vector<1x2xf32> to vector<1x2xf32>
    %651 = vector.broadcast %650 : vector<1x2xf32> to vector<8x2xf32>
    %652 = arith.mulf %13, %651 : vector<8x2xf32>
    %653 = arith.addf %644, %652 : vector<8x2xf32>
    %654 = arith.mulf %37, %651 : vector<8x2xf32>
    %655 = arith.addf %646, %654 : vector<8x2xf32>
    %656 = arith.mulf %61, %651 : vector<8x2xf32>
    %657 = arith.addf %648, %656 : vector<8x2xf32>
    %658 = vector.extract_strided_slice %612 {offsets = [4, 0], sizes = [1, 2], strides = [1, 1]} : vector<8x2xf32> to vector<1x2xf32>
    %659 = vector.shape_cast %658 : vector<1x2xf32> to vector<1x2xf32>
    %660 = vector.broadcast %659 : vector<1x2xf32> to vector<8x2xf32>
    %661 = arith.mulf %16, %660 : vector<8x2xf32>
    %662 = arith.addf %653, %661 : vector<8x2xf32>
    %663 = arith.mulf %40, %660 : vector<8x2xf32>
    %664 = arith.addf %655, %663 : vector<8x2xf32>
    %665 = arith.mulf %64, %660 : vector<8x2xf32>
    %666 = arith.addf %657, %665 : vector<8x2xf32>
    %667 = vector.extract_strided_slice %612 {offsets = [5, 0], sizes = [1, 2], strides = [1, 1]} : vector<8x2xf32> to vector<1x2xf32>
    %668 = vector.shape_cast %667 : vector<1x2xf32> to vector<1x2xf32>
    %669 = vector.broadcast %668 : vector<1x2xf32> to vector<8x2xf32>
    %670 = arith.mulf %19, %669 : vector<8x2xf32>
    %671 = arith.addf %662, %670 : vector<8x2xf32>
    %672 = arith.mulf %43, %669 : vector<8x2xf32>
    %673 = arith.addf %664, %672 : vector<8x2xf32>
    %674 = arith.mulf %67, %669 : vector<8x2xf32>
    %675 = arith.addf %666, %674 : vector<8x2xf32>
    %676 = vector.extract_strided_slice %612 {offsets = [6, 0], sizes = [1, 2], strides = [1, 1]} : vector<8x2xf32> to vector<1x2xf32>
    %677 = vector.shape_cast %676 : vector<1x2xf32> to vector<1x2xf32>
    %678 = vector.broadcast %677 : vector<1x2xf32> to vector<8x2xf32>
    %679 = arith.mulf %22, %678 : vector<8x2xf32>
    %680 = arith.addf %671, %679 : vector<8x2xf32>
    %681 = arith.mulf %46, %678 : vector<8x2xf32>
    %682 = arith.addf %673, %681 : vector<8x2xf32>
    %683 = arith.mulf %70, %678 : vector<8x2xf32>
    %684 = arith.addf %675, %683 : vector<8x2xf32>
    %685 = vector.extract_strided_slice %612 {offsets = [7, 0], sizes = [1, 2], strides = [1, 1]} : vector<8x2xf32> to vector<1x2xf32>
    %686 = vector.shape_cast %685 : vector<1x2xf32> to vector<1x2xf32>
    %687 = vector.broadcast %686 : vector<1x2xf32> to vector<8x2xf32>
    %688 = arith.mulf %25, %687 : vector<8x2xf32>
    %689 = arith.addf %680, %688 : vector<8x2xf32>
    %690 = arith.mulf %49, %687 : vector<8x2xf32>
    %691 = arith.addf %682, %690 : vector<8x2xf32>
    %692 = arith.mulf %73, %687 : vector<8x2xf32>
    %693 = arith.addf %684, %692 : vector<8x2xf32>
    %694 = arith.addf %617, %689 : vector<8x2xf32>
    %695 = arith.negf %694 : vector<8x2xf32>
    %696 = math.exp %695 : vector<8x2xf32>
    %cst_18 = arith.constant 1.000000e+00 : f32
    %697 = vector.broadcast %cst_18 : f32 to vector<8x2xf32>
    %698 = arith.addf %697, %696 : vector<8x2xf32>
    %699 = arith.divf %697, %698 : vector<8x2xf32>
    %700 = arith.addf %619, %691 : vector<8x2xf32>
    %701 = arith.negf %700 : vector<8x2xf32>
    %702 = math.exp %701 : vector<8x2xf32>
    %cst_19 = arith.constant 1.000000e+00 : f32
    %703 = vector.broadcast %cst_19 : f32 to vector<8x2xf32>
    %704 = arith.addf %703, %702 : vector<8x2xf32>
    %705 = arith.divf %703, %704 : vector<8x2xf32>
    %706 = arith.mulf %699, %693 : vector<8x2xf32>
    %707 = arith.addf %621, %706 : vector<8x2xf32>
    %708 = math.tanh %707 : vector<8x2xf32>
    %cst_20 = arith.constant 1.000000e+00 : f32
    %709 = vector.broadcast %cst_20 : f32 to vector<8x2xf32>
    %710 = arith.subf %709, %705 : vector<8x2xf32>
    %711 = arith.mulf %710, %708 : vector<8x2xf32>
    %712 = arith.mulf %705, %612 : vector<8x2xf32>
    %713 = arith.addf %711, %712 : vector<8x2xf32>
    %714 = vector.extract_strided_slice %0 {offsets = [6, 0], sizes = [1, 2], strides = [1, 1]} : vector<8x2xf32> to vector<1x2xf32>
    %715 = vector.shape_cast %714 : vector<1x2xf32> to vector<1x2xf32>
    %716 = vector.broadcast %715 : vector<1x2xf32> to vector<8x2xf32>
    %717 = arith.mulf %76, %716 : vector<8x2xf32>
    %718 = arith.addf %717, %85 : vector<8x2xf32>
    %719 = arith.mulf %79, %716 : vector<8x2xf32>
    %720 = arith.addf %719, %88 : vector<8x2xf32>
    %721 = arith.mulf %82, %716 : vector<8x2xf32>
    %722 = arith.addf %721, %91 : vector<8x2xf32>
    %723 = vector.extract_strided_slice %713 {offsets = [0, 0], sizes = [1, 2], strides = [1, 1]} : vector<8x2xf32> to vector<1x2xf32>
    %724 = vector.shape_cast %723 : vector<1x2xf32> to vector<1x2xf32>
    %725 = vector.broadcast %724 : vector<1x2xf32> to vector<8x2xf32>
    %726 = arith.mulf %4, %725 : vector<8x2xf32>
    %727 = arith.addf %94, %726 : vector<8x2xf32>
    %728 = arith.mulf %28, %725 : vector<8x2xf32>
    %729 = arith.addf %97, %728 : vector<8x2xf32>
    %730 = arith.mulf %52, %725 : vector<8x2xf32>
    %731 = arith.addf %100, %730 : vector<8x2xf32>
    %732 = vector.extract_strided_slice %713 {offsets = [1, 0], sizes = [1, 2], strides = [1, 1]} : vector<8x2xf32> to vector<1x2xf32>
    %733 = vector.shape_cast %732 : vector<1x2xf32> to vector<1x2xf32>
    %734 = vector.broadcast %733 : vector<1x2xf32> to vector<8x2xf32>
    %735 = arith.mulf %7, %734 : vector<8x2xf32>
    %736 = arith.addf %727, %735 : vector<8x2xf32>
    %737 = arith.mulf %31, %734 : vector<8x2xf32>
    %738 = arith.addf %729, %737 : vector<8x2xf32>
    %739 = arith.mulf %55, %734 : vector<8x2xf32>
    %740 = arith.addf %731, %739 : vector<8x2xf32>
    %741 = vector.extract_strided_slice %713 {offsets = [2, 0], sizes = [1, 2], strides = [1, 1]} : vector<8x2xf32> to vector<1x2xf32>
    %742 = vector.shape_cast %741 : vector<1x2xf32> to vector<1x2xf32>
    %743 = vector.broadcast %742 : vector<1x2xf32> to vector<8x2xf32>
    %744 = arith.mulf %10, %743 : vector<8x2xf32>
    %745 = arith.addf %736, %744 : vector<8x2xf32>
    %746 = arith.mulf %34, %743 : vector<8x2xf32>
    %747 = arith.addf %738, %746 : vector<8x2xf32>
    %748 = arith.mulf %58, %743 : vector<8x2xf32>
    %749 = arith.addf %740, %748 : vector<8x2xf32>
    %750 = vector.extract_strided_slice %713 {offsets = [3, 0], sizes = [1, 2], strides = [1, 1]} : vector<8x2xf32> to vector<1x2xf32>
    %751 = vector.shape_cast %750 : vector<1x2xf32> to vector<1x2xf32>
    %752 = vector.broadcast %751 : vector<1x2xf32> to vector<8x2xf32>
    %753 = arith.mulf %13, %752 : vector<8x2xf32>
    %754 = arith.addf %745, %753 : vector<8x2xf32>
    %755 = arith.mulf %37, %752 : vector<8x2xf32>
    %756 = arith.addf %747, %755 : vector<8x2xf32>
    %757 = arith.mulf %61, %752 : vector<8x2xf32>
    %758 = arith.addf %749, %757 : vector<8x2xf32>
    %759 = vector.extract_strided_slice %713 {offsets = [4, 0], sizes = [1, 2], strides = [1, 1]} : vector<8x2xf32> to vector<1x2xf32>
    %760 = vector.shape_cast %759 : vector<1x2xf32> to vector<1x2xf32>
    %761 = vector.broadcast %760 : vector<1x2xf32> to vector<8x2xf32>
    %762 = arith.mulf %16, %761 : vector<8x2xf32>
    %763 = arith.addf %754, %762 : vector<8x2xf32>
    %764 = arith.mulf %40, %761 : vector<8x2xf32>
    %765 = arith.addf %756, %764 : vector<8x2xf32>
    %766 = arith.mulf %64, %761 : vector<8x2xf32>
    %767 = arith.addf %758, %766 : vector<8x2xf32>
    %768 = vector.extract_strided_slice %713 {offsets = [5, 0], sizes = [1, 2], strides = [1, 1]} : vector<8x2xf32> to vector<1x2xf32>
    %769 = vector.shape_cast %768 : vector<1x2xf32> to vector<1x2xf32>
    %770 = vector.broadcast %769 : vector<1x2xf32> to vector<8x2xf32>
    %771 = arith.mulf %19, %770 : vector<8x2xf32>
    %772 = arith.addf %763, %771 : vector<8x2xf32>
    %773 = arith.mulf %43, %770 : vector<8x2xf32>
    %774 = arith.addf %765, %773 : vector<8x2xf32>
    %775 = arith.mulf %67, %770 : vector<8x2xf32>
    %776 = arith.addf %767, %775 : vector<8x2xf32>
    %777 = vector.extract_strided_slice %713 {offsets = [6, 0], sizes = [1, 2], strides = [1, 1]} : vector<8x2xf32> to vector<1x2xf32>
    %778 = vector.shape_cast %777 : vector<1x2xf32> to vector<1x2xf32>
    %779 = vector.broadcast %778 : vector<1x2xf32> to vector<8x2xf32>
    %780 = arith.mulf %22, %779 : vector<8x2xf32>
    %781 = arith.addf %772, %780 : vector<8x2xf32>
    %782 = arith.mulf %46, %779 : vector<8x2xf32>
    %783 = arith.addf %774, %782 : vector<8x2xf32>
    %784 = arith.mulf %70, %779 : vector<8x2xf32>
    %785 = arith.addf %776, %784 : vector<8x2xf32>
    %786 = vector.extract_strided_slice %713 {offsets = [7, 0], sizes = [1, 2], strides = [1, 1]} : vector<8x2xf32> to vector<1x2xf32>
    %787 = vector.shape_cast %786 : vector<1x2xf32> to vector<1x2xf32>
    %788 = vector.broadcast %787 : vector<1x2xf32> to vector<8x2xf32>
    %789 = arith.mulf %25, %788 : vector<8x2xf32>
    %790 = arith.addf %781, %789 : vector<8x2xf32>
    %791 = arith.mulf %49, %788 : vector<8x2xf32>
    %792 = arith.addf %783, %791 : vector<8x2xf32>
    %793 = arith.mulf %73, %788 : vector<8x2xf32>
    %794 = arith.addf %785, %793 : vector<8x2xf32>
    %795 = arith.addf %718, %790 : vector<8x2xf32>
    %796 = arith.negf %795 : vector<8x2xf32>
    %797 = math.exp %796 : vector<8x2xf32>
    %cst_21 = arith.constant 1.000000e+00 : f32
    %798 = vector.broadcast %cst_21 : f32 to vector<8x2xf32>
    %799 = arith.addf %798, %797 : vector<8x2xf32>
    %800 = arith.divf %798, %799 : vector<8x2xf32>
    %801 = arith.addf %720, %792 : vector<8x2xf32>
    %802 = arith.negf %801 : vector<8x2xf32>
    %803 = math.exp %802 : vector<8x2xf32>
    %cst_22 = arith.constant 1.000000e+00 : f32
    %804 = vector.broadcast %cst_22 : f32 to vector<8x2xf32>
    %805 = arith.addf %804, %803 : vector<8x2xf32>
    %806 = arith.divf %804, %805 : vector<8x2xf32>
    %807 = arith.mulf %800, %794 : vector<8x2xf32>
    %808 = arith.addf %722, %807 : vector<8x2xf32>
    %809 = math.tanh %808 : vector<8x2xf32>
    %cst_23 = arith.constant 1.000000e+00 : f32
    %810 = vector.broadcast %cst_23 : f32 to vector<8x2xf32>
    %811 = arith.subf %810, %806 : vector<8x2xf32>
    %812 = arith.mulf %811, %809 : vector<8x2xf32>
    %813 = arith.mulf %806, %713 : vector<8x2xf32>
    %814 = arith.addf %812, %813 : vector<8x2xf32>
    %815 = vector.extract_strided_slice %0 {offsets = [7, 0], sizes = [1, 2], strides = [1, 1]} : vector<8x2xf32> to vector<1x2xf32>
    %816 = vector.shape_cast %815 : vector<1x2xf32> to vector<1x2xf32>
    %817 = vector.broadcast %816 : vector<1x2xf32> to vector<8x2xf32>
    %818 = arith.mulf %76, %817 : vector<8x2xf32>
    %819 = arith.addf %818, %85 : vector<8x2xf32>
    %820 = arith.mulf %79, %817 : vector<8x2xf32>
    %821 = arith.addf %820, %88 : vector<8x2xf32>
    %822 = arith.mulf %82, %817 : vector<8x2xf32>
    %823 = arith.addf %822, %91 : vector<8x2xf32>
    %824 = vector.extract_strided_slice %814 {offsets = [0, 0], sizes = [1, 2], strides = [1, 1]} : vector<8x2xf32> to vector<1x2xf32>
    %825 = vector.shape_cast %824 : vector<1x2xf32> to vector<1x2xf32>
    %826 = vector.broadcast %825 : vector<1x2xf32> to vector<8x2xf32>
    %827 = arith.mulf %4, %826 : vector<8x2xf32>
    %828 = arith.addf %94, %827 : vector<8x2xf32>
    %829 = arith.mulf %28, %826 : vector<8x2xf32>
    %830 = arith.addf %97, %829 : vector<8x2xf32>
    %831 = arith.mulf %52, %826 : vector<8x2xf32>
    %832 = arith.addf %100, %831 : vector<8x2xf32>
    %833 = vector.extract_strided_slice %814 {offsets = [1, 0], sizes = [1, 2], strides = [1, 1]} : vector<8x2xf32> to vector<1x2xf32>
    %834 = vector.shape_cast %833 : vector<1x2xf32> to vector<1x2xf32>
    %835 = vector.broadcast %834 : vector<1x2xf32> to vector<8x2xf32>
    %836 = arith.mulf %7, %835 : vector<8x2xf32>
    %837 = arith.addf %828, %836 : vector<8x2xf32>
    %838 = arith.mulf %31, %835 : vector<8x2xf32>
    %839 = arith.addf %830, %838 : vector<8x2xf32>
    %840 = arith.mulf %55, %835 : vector<8x2xf32>
    %841 = arith.addf %832, %840 : vector<8x2xf32>
    %842 = vector.extract_strided_slice %814 {offsets = [2, 0], sizes = [1, 2], strides = [1, 1]} : vector<8x2xf32> to vector<1x2xf32>
    %843 = vector.shape_cast %842 : vector<1x2xf32> to vector<1x2xf32>
    %844 = vector.broadcast %843 : vector<1x2xf32> to vector<8x2xf32>
    %845 = arith.mulf %10, %844 : vector<8x2xf32>
    %846 = arith.addf %837, %845 : vector<8x2xf32>
    %847 = arith.mulf %34, %844 : vector<8x2xf32>
    %848 = arith.addf %839, %847 : vector<8x2xf32>
    %849 = arith.mulf %58, %844 : vector<8x2xf32>
    %850 = arith.addf %841, %849 : vector<8x2xf32>
    %851 = vector.extract_strided_slice %814 {offsets = [3, 0], sizes = [1, 2], strides = [1, 1]} : vector<8x2xf32> to vector<1x2xf32>
    %852 = vector.shape_cast %851 : vector<1x2xf32> to vector<1x2xf32>
    %853 = vector.broadcast %852 : vector<1x2xf32> to vector<8x2xf32>
    %854 = arith.mulf %13, %853 : vector<8x2xf32>
    %855 = arith.addf %846, %854 : vector<8x2xf32>
    %856 = arith.mulf %37, %853 : vector<8x2xf32>
    %857 = arith.addf %848, %856 : vector<8x2xf32>
    %858 = arith.mulf %61, %853 : vector<8x2xf32>
    %859 = arith.addf %850, %858 : vector<8x2xf32>
    %860 = vector.extract_strided_slice %814 {offsets = [4, 0], sizes = [1, 2], strides = [1, 1]} : vector<8x2xf32> to vector<1x2xf32>
    %861 = vector.shape_cast %860 : vector<1x2xf32> to vector<1x2xf32>
    %862 = vector.broadcast %861 : vector<1x2xf32> to vector<8x2xf32>
    %863 = arith.mulf %16, %862 : vector<8x2xf32>
    %864 = arith.addf %855, %863 : vector<8x2xf32>
    %865 = arith.mulf %40, %862 : vector<8x2xf32>
    %866 = arith.addf %857, %865 : vector<8x2xf32>
    %867 = arith.mulf %64, %862 : vector<8x2xf32>
    %868 = arith.addf %859, %867 : vector<8x2xf32>
    %869 = vector.extract_strided_slice %814 {offsets = [5, 0], sizes = [1, 2], strides = [1, 1]} : vector<8x2xf32> to vector<1x2xf32>
    %870 = vector.shape_cast %869 : vector<1x2xf32> to vector<1x2xf32>
    %871 = vector.broadcast %870 : vector<1x2xf32> to vector<8x2xf32>
    %872 = arith.mulf %19, %871 : vector<8x2xf32>
    %873 = arith.addf %864, %872 : vector<8x2xf32>
    %874 = arith.mulf %43, %871 : vector<8x2xf32>
    %875 = arith.addf %866, %874 : vector<8x2xf32>
    %876 = arith.mulf %67, %871 : vector<8x2xf32>
    %877 = arith.addf %868, %876 : vector<8x2xf32>
    %878 = vector.extract_strided_slice %814 {offsets = [6, 0], sizes = [1, 2], strides = [1, 1]} : vector<8x2xf32> to vector<1x2xf32>
    %879 = vector.shape_cast %878 : vector<1x2xf32> to vector<1x2xf32>
    %880 = vector.broadcast %879 : vector<1x2xf32> to vector<8x2xf32>
    %881 = arith.mulf %22, %880 : vector<8x2xf32>
    %882 = arith.addf %873, %881 : vector<8x2xf32>
    %883 = arith.mulf %46, %880 : vector<8x2xf32>
    %884 = arith.addf %875, %883 : vector<8x2xf32>
    %885 = arith.mulf %70, %880 : vector<8x2xf32>
    %886 = arith.addf %877, %885 : vector<8x2xf32>
    %887 = vector.extract_strided_slice %814 {offsets = [7, 0], sizes = [1, 2], strides = [1, 1]} : vector<8x2xf32> to vector<1x2xf32>
    %888 = vector.shape_cast %887 : vector<1x2xf32> to vector<1x2xf32>
    %889 = vector.broadcast %888 : vector<1x2xf32> to vector<8x2xf32>
    %890 = arith.mulf %25, %889 : vector<8x2xf32>
    %891 = arith.addf %882, %890 : vector<8x2xf32>
    %892 = arith.mulf %49, %889 : vector<8x2xf32>
    %893 = arith.addf %884, %892 : vector<8x2xf32>
    %894 = arith.mulf %73, %889 : vector<8x2xf32>
    %895 = arith.addf %886, %894 : vector<8x2xf32>
    %896 = arith.addf %819, %891 : vector<8x2xf32>
    %897 = arith.negf %896 : vector<8x2xf32>
    %898 = math.exp %897 : vector<8x2xf32>
    %cst_24 = arith.constant 1.000000e+00 : f32
    %899 = vector.broadcast %cst_24 : f32 to vector<8x2xf32>
    %900 = arith.addf %899, %898 : vector<8x2xf32>
    %901 = arith.divf %899, %900 : vector<8x2xf32>
    %902 = arith.addf %821, %893 : vector<8x2xf32>
    %903 = arith.negf %902 : vector<8x2xf32>
    %904 = math.exp %903 : vector<8x2xf32>
    %cst_25 = arith.constant 1.000000e+00 : f32
    %905 = vector.broadcast %cst_25 : f32 to vector<8x2xf32>
    %906 = arith.addf %905, %904 : vector<8x2xf32>
    %907 = arith.divf %905, %906 : vector<8x2xf32>
    %908 = arith.mulf %901, %895 : vector<8x2xf32>
    %909 = arith.addf %823, %908 : vector<8x2xf32>
    %910 = math.tanh %909 : vector<8x2xf32>
    %cst_26 = arith.constant 1.000000e+00 : f32
    %911 = vector.broadcast %cst_26 : f32 to vector<8x2xf32>
    %912 = arith.subf %911, %907 : vector<8x2xf32>
    %913 = arith.mulf %912, %910 : vector<8x2xf32>
    %914 = arith.mulf %907, %814 : vector<8x2xf32>
    %915 = arith.addf %913, %914 : vector<8x2xf32>
    %916 = arith.mulf %103, %915 : vector<8x2xf32>
    %cst_27 = arith.constant dense<0.000000e+00> : vector<2xf32>
    %917 = vector.multi_reduction <add>, %916, %cst_27 [0] : vector<8x2xf32> to vector<2xf32>
    %918 = vector.shape_cast %917 : vector<2xf32> to vector<1x2xf32>
    %919 = arith.addf %918, %106 : vector<1x2xf32>
    %c0_28 = arith.constant 0 : index
    %c0_29 = arith.constant 0 : index
    %920 = vector.load %arg2[%c0_28, %c0_29] : memref<1x2xf32, #tpu.memory_space<vmem>>, vector<1x2xf32>
    tpu.vector_store %arg2[%c0_28, %c0_29], %919 {strides = array<i32>} : memref<1x2xf32, #tpu.memory_space<vmem>>, vector<1x2xf32>,
    return
  }
}

</mosaic_0001>

<bundles_post_ra>
// kernel: gru_model_forward.1
= control target key start
LH: loop header
LB: loop body
LE: loop exit
PB: predicated region body
PF: predicated region fallthrough
CT: control target
= control target key end

     0   :  { %v1230_v1 = vmov 30   ;;  %v1231_v2 = vmov 0   ;;  %s1867_s0 = inlined_call_operand.vmem [shape: f32[8,2], index: 0, kind: input, shape index: {}]   ;;  %s1868_s1 = inlined_call_operand.vmem [shape: f32[8,128], index: 1, kind: input, shape index: {}]   ;;  %s1869_s2 = inlined_call_operand.hbm [shape: f32[1,2], index: 2, kind: output, shape index: {}]  }
   0x1   :  { %v1284_v0 = vld [vmem:[%s1868_s1] sm:$0xff]  ;;  %1091 = vset.pattern.permute.xlu1 %v1230_v1  ;;  %1089 = vset.pattern.permute.xlu0 %v1231_v2 }
   0x2   :  { %7 = vsyncpa [#allocation3], 0  ;;  %136 = vperm.xlu1 %1091, %v1284_v0   ;;  %16 = vperm.xlu0 %1089, %v1284_v0   ;;  %v1232_v3 = vmov 2   ;;  %v1233_v4 = vmov 1   ;;  %v1234_v5 = vmov 3   ;;  %v1235_v6 = vmov 4  }
   0x3   :  { %v1236_v7 = vmov 5   ;;  %v1237_v8 = vmov 8   ;;  %v1238_v9 = vmov 6   ;;  %v1239_v10 = vmov 9   ;;  %v12_v53 = vld [vmem:[%s1867_s0] sm:$0xff] }
   0x4   :  { %v1240_v11 = vmov 7   ;;  %v1241_v12 = vmov 10   ;;  %v1242_v13 = vmov 24   ;;  %v1243_v14 = vmov 13  }
   0x5   :  { %v1244_v15 = vmov 31   ;;  %v1245_v16 = vmov 25   ;;  %v1246_v17 = vmov 27   ;;  %v1247_v18 = vmov 17  }
   0x6   :  { %1092 = vset.pattern.permute.xlu1 %v1232_v3  ;;  %1090 = vset.pattern.permute.xlu0 %v1233_v4  ;;  %v1248_v19 = vmov 11   ;;  %v1249_v20 = vmov 19   ;;  %v1250_v21 = vmov 12   ;;  %v1251_v22 = vmov 22  }
   0x7   :  { %24 = vperm.xlu1 %1092, %v1284_v0   ;;  %20 = vperm.xlu0 %1090, %v1284_v0   ;;  %v1252_v23 = vmov 14   ;;  %v1253_v24 = vmov 29   ;;  %v1254_v25 = vmov 15   ;;  %v1255_v26 = vmov 16  }
   0x8   :  { %v1256_v27 = vmov 28   ;;  %v1257_v28 = vmov 32   ;;  %v1258_v29 = vmov 18   ;;  %v1259_v30 = vmov 20  }
   0x9   :  { %v1260_v31 = vmov 21   ;;  %v1261_v32 = vmov 23   ;;  %v1262_v33 = vmov 26   ;;  %v155_v42 = vlaneseq }
   0xa   :  { %vm1012_vm0 = vcmask 15360   ;;  %vm1021_vm1 = vcmask 8192  }
   0xb   :  { %1093 = vset.pattern.permute.xlu1 %v1234_v5  ;;  %1094 = vset.pattern.permute.xlu0 %v1235_v6  ;;  %v156_v43 = vshrl.u32 %v155_v42, 7 }
   0xc   :  { %28 = vperm.xlu1 %1093, %v1284_v0   ;;  %32 = vperm.xlu0 %1094, %v1284_v0  }
   0xd   :  { %v1339_v46 = vsub.s32 1, %v156_v43  ;;  %v1341_v47 = vsub.s32 2, %v156_v43  ;;  %v1343_v48 = vsub.s32 3, %v156_v43  ;;  %v1345_v49 = vsub.s32 4, %v156_v43 }
   0xe   :  { %v1347_v50 = vsub.s32 5, %v156_v43  ;;  %v1349_v51 = vsub.s32 6, %v156_v43  ;;  %v1351_v52 = vsub.s32 7, %v156_v43 }
   0xf   :  { %v1359_v55 = vrot.slane %v12_v53, %v1339_v46  ;;  %v1362_v56 = vrot.slane %v12_v53, %v1341_v47  ;;  %v1365_v57 = vrot.slane %v12_v53, %v1343_v48  ;;  %v1370_v59 = vrot.slane %v12_v53, %v1345_v49 }
  0x10   :  { %1095 = vset.pattern.permute.xlu1 %v1236_v7  ;;  %1097 = vset.pattern.permute.xlu0 %v1237_v8  ;;  %v1373_v60 = vrot.slane %v12_v53, %v1347_v50  ;;  %v1376_v61 = vrot.slane %v12_v53, %v1349_v51  ;;  %v1379_v62 = vrot.slane %v12_v53, %v1351_v52 }
  0x11   :  { %36 = vperm.xlu1 %1095, %v1284_v0   ;;  %48 = vperm.xlu0 %1097, %v1284_v0  }
  0x15   :  { %1096 = vset.pattern.permute.xlu1 %v1238_v9  ;;  %1100 = vset.pattern.permute.xlu0 %v1239_v10 }
  0x16   :  { %40 = vperm.xlu1 %1096, %v1284_v0   ;;  %52 = vperm.xlu0 %1100, %v1284_v0  }
  0x1a   :  { %1098 = vset.pattern.permute.xlu1 %v1240_v11  ;;  %1103 = vset.pattern.permute.xlu0 %v1241_v12 }
  0x1b   :  { %44 = vperm.xlu1 %1098, %v1284_v0   ;;  %56 = vperm.xlu0 %1103, %v1284_v0  }
  0x1f   :  { %1099 = vset.pattern.permute.xlu1 %v1242_v13  ;;  %1106 = vset.pattern.permute.xlu0 %v1243_v14 }
  0x20   :  { %112 = vperm.xlu1 %1099, %v1284_v0   ;;  %68 = vperm.xlu0 %1106, %v1284_v0  }
  0x24   :  { %1101 = vset.pattern.permute.xlu1 %v1244_v15  ;;  %1109 = vset.pattern.permute.xlu0 %v1245_v16 }
  0x25   :  { %140 = vperm.xlu1 %1101, %v1284_v0   ;;  %116 = vperm.xlu0 %1109, %v1284_v0  }
  0x29   :  { %1102 = vset.pattern.permute.xlu1 %v1246_v17  ;;  %1112 = vset.pattern.permute.xlu0 %v1247_v18 }
  0x2a   :  { %124 = vperm.xlu1 %1102, %v1284_v0   ;;  %84 = vperm.xlu0 %1112, %v1284_v0  }
  0x2e   :  { %1104 = vset.pattern.permute.xlu1 %v1248_v19  ;;  %1115 = vset.pattern.permute.xlu0 %v1249_v20 }
  0x2f   :  { %60 = vperm.xlu1 %1104, %v1284_v0   ;;  %92 = vperm.xlu0 %1115, %v1284_v0  }
  0x33   :  { %1105 = vset.pattern.permute.xlu1 %v1250_v21  ;;  %1118 = vset.pattern.permute.xlu0 %v1251_v22 }
  0x34   :  { %64 = vperm.xlu1 %1105, %v1284_v0   ;;  %104 = vperm.xlu0 %1118, %v1284_v0  }
  0x38   :  { %1107 = vset.pattern.permute.xlu1 %v1252_v23  ;;  %1121 = vset.pattern.permute.xlu0 %v1253_v24 }
  0x39   :  { %72 = vperm.xlu1 %1107, %v1284_v0   ;;  %132 = vperm.xlu0 %1121, %v1284_v0  }
  0x3d   :  { %1108 = vset.pattern.permute.xlu1 %v1254_v25 }
  0x3e   :  { %76 = vperm.xlu1 %1108, %v1284_v0  }
  0x42   :  { %1110 = vset.pattern.permute.xlu1 %v1255_v26 }
  0x43   :  { %80 = vperm.xlu1 %1110, %v1284_v0  }
  0x47   :  { %1111 = vset.pattern.permute.xlu1 %v1256_v27 }
  0x48   :  { %128 = vperm.xlu1 %1111, %v1284_v0  }
  0x4c   :  { %1113 = vset.pattern.permute.xlu1 %v1257_v28 }
  0x4d   :  { %144 = vperm.xlu1 %1113, %v1284_v0  }
  0x51   :  { %1114 = vset.pattern.permute.xlu1 %v1258_v29 }
  0x52   :  { %88 = vperm.xlu1 %1114, %v1284_v0  }
  0x56   :  { %1116 = vset.pattern.permute.xlu1 %v1259_v30 }
  0x57   :  { %96 = vperm.xlu1 %1116, %v1284_v0  }
  0x5b   :  { %1117 = vset.pattern.permute.xlu1 %v1260_v31 }
  0x5c   :  { %100 = vperm.xlu1 %1117, %v1284_v0  }
  0x60   :  { %1119 = vset.pattern.permute.xlu1 %v1261_v32 }
  0x61   :  { %108 = vperm.xlu1 %1119, %v1284_v0  }
  0x65   :  { %1120 = vset.pattern.permute.xlu1 %v1262_v33 }
  0x66   :  { %120 = vperm.xlu1 %1120, %v1284_v0  }
  0x81   :  { %v1319_v34 = vpop.permute.xlu1 %136  ;;  %v1321_v35 = vpop.permute.xlu0 %16 }
  0x82   :  { %v165_v10 = vmul.f32 0.0, %v1321_v35 }
  0x84   :  { %v166_v20 = vadd.f32 %v165_v10, %v1319_v34 }
  0x86   :  { %v1323_v36 = vpop.permute.xlu1 %24  ;;  %v1325_v37 = vpop.permute.xlu0 %20 }
  0x87   :  { %v171_v18 = vmul.f32 0.0, %v1325_v37  ;;  %v177_v29 = vmul.f32 0.0, %v1323_v36 }
  0x89   :  { %v172_v28 = vadd.f32 %v171_v18, %v166_v20 }
  0x8b   :  { %v1327_v38 = vpop.permute.xlu1 %28  ;;  %v1329_v39 = vpop.permute.xlu0 %32  ;;  %v178_v32 = vadd.f32 %v177_v29, %v172_v28 }
  0x8c   :  { %v183_v33 = vmul.f32 0.0, %v1327_v38 }
  0x90   :  { %v1331_v40 = vpop.permute.xlu1 %36  ;;  %v1333_v41 = vpop.permute.xlu0 %48 }
  0x91   :  { %v167_v31 = vmul.f32 0.0, %v1333_v41  ;;  %v195_v18 = vmul.f32 0.0, %v1331_v40 }
  0x95   :  { %v1335_v44 = vpop.permute.xlu1 %40  ;;  %v1337_v45 = vpop.permute.xlu0 %52 }
  0x96   :  { %v173_v42 = vmul.f32 0.0, %v1337_v45 }
  0x9a   :  { %v1356_v54 = vpop.permute.xlu1 %44  ;;  %v1367_v58 = vpop.permute.xlu0 %56 }
  0x9f   :  { %v113_v63 = vpop.permute.xlu1 %112  ;;  %v1384_v3 = vpop.permute.xlu0 %68 }
  0xa0   :  { %v238_v0 = vmul.f32 %v1359_v55, %v113_v63  ;;  %v349_v1 = vmul.f32 %v1362_v56, %v113_v63  ;;  %v460_v2 = vmul.f32 %v1365_v57, %v113_v63  ;;  %v571_v4 = vmul.f32 %v1370_v59, %v113_v63 }
  0xa1   :  { %v682_v5 = vmul.f32 %v1373_v60, %v113_v63  ;;  %v793_v6 = vmul.f32 %v1376_v61, %v113_v63  ;;  %v904_v7 = vmul.f32 %v1379_v62, %v113_v63 }
  0xa4   :  { %v1390_v8 = vpop.permute.xlu1 %140  ;;  %v117_v9 = vpop.permute.xlu0 %116 }
  0xa5   :  { %v240_v11 = vmul.f32 %v1359_v55, %v117_v9  ;;  %v351_v12 = vmul.f32 %v1362_v56, %v117_v9  ;;  %v462_v13 = vmul.f32 %v1365_v57, %v117_v9  ;;  %v573_v14 = vmul.f32 %v1370_v59, %v117_v9 }
  0xa6   :  { %v684_v15 = vmul.f32 %v1373_v60, %v117_v9  ;;  %v795_v16 = vmul.f32 %v1376_v61, %v117_v9  ;;  %v906_v17 = vmul.f32 %v1379_v62, %v117_v9 }
  0xa9   :  { %v125_v19 = vpop.permute.xlu1 %124 }
  0xaa   :  { %v1402_v21 = vadd.f32 %v238_v0, %v125_v19  ;;  %v1404_v22 = vadd.f32 %v349_v1, %v125_v19  ;;  %v1406_v23 = vadd.f32 %v460_v2, %v125_v19  ;;  %v1408_v24 = vadd.f32 %v571_v4, %v125_v19 }
  0xab   :  { %v1410_v25 = vadd.f32 %v682_v5, %v125_v19  ;;  %v1412_v26 = vadd.f32 %v793_v6, %v125_v19  ;;  %v1414_v27 = vadd.f32 %v904_v7, %v125_v19  ;;  %v168_v0 = vadd.f32 %v167_v31, %v1390_v8 }
  0xac   :  { %1870 = vst [vmem:[#allocation5_spill] sm:$0xff] %v1402_v21  ;;  %1871 = vst [vmem:[#allocation6_spill] sm:$0xff] %v1404_v22  ;;  %v184_v2 = vadd.f32 %v183_v33, %v178_v32  ;;  %v189_v4 = vmul.f32 0.0, %v1329_v39  ;;  %v1426_v5 = vsub.s32 0, %v156_v43  ;;  %v179_v7 = vmul.f32 0.0, %v1367_v58 }
  0xad   :  { %1872 = vst [vmem:[#allocation7_spill] sm:$0xff] %v1406_v23  ;;  %1873 = vst [vmem:[#allocation8_spill] sm:$0xff] %v1408_v24  ;;  %v174_v6 = vadd.f32 %v173_v42, %v168_v0  ;;  %v201_v31 = vmul.f32 0.0, %v1335_v44  ;;  %v207_v42 = vmul.f32 0.0, %v1356_v54 }
  0xae   :  { %1874 = vst [vmem:[#allocation9_spill] sm:$0xff] %v1410_v25  ;;  %1875 = vst [vmem:[#allocation10_spill] sm:$0xff] %v1412_v26  ;;  %v1417_v30 = vpop.permute.xlu1 %60  ;;  %v190_v10 = vadd.f32 %v189_v4, %v184_v2  ;;  %v1431_v20 = vrot.slane %v12_v53, %v1426_v5  ;;  %v197_v25 = vmul.f32 0.0, %v1384_v3 }
  0xaf   :  { %1876 = vst [vmem:[#allocation11_spill] sm:$0xff] %v1414_v27  ;;  %v185_v29 = vmul.f32 0.0, %v1417_v30  ;;  %v180_v32 = vadd.f32 %v179_v7, %v174_v6 }
  0xb0   :  { %v196_v43 = vadd.f32 %v195_v18, %v190_v10  ;;  %v159_v0 = vmul.f32 %v1431_v20, %v113_v63  ;;  %v161_v10 = vmul.f32 %v1431_v20, %v117_v9 }
  0xb1   :  { %v186_v2 = vadd.f32 %v185_v29, %v180_v32 }
  0xb2   :  { %v202_v27 = vadd.f32 %v201_v31, %v196_v43  ;;  %v160_v53 = vadd.f32 %v159_v0, %v125_v19 }
  0xb3   :  { %v1423_v1 = vpop.permute.xlu1 %64 }
  0xb4   :  { %v191_v33 = vmul.f32 0.0, %v1423_v1  ;;  %v208_v24 = vadd.f32 %v207_v42, %v202_v27 }
  0xb6   :  { %v192_v26 = vadd.f32 %v191_v33, %v186_v2  ;;  %v213_v23 = vadd.f32 %v208_v24, %v160_v53 }
  0xb8   :  { %v1433_v28 = vpop.permute.xlu1 %72  ;;  %v198_v6 = vadd.f32 %v197_v25, %v192_v26  ;;  %v1037_v18 = vmul.f32 -1.442695, %v213_v23  ;;  %v1462_v23 = vpop.permute.xlu0 %84 }
  0xb9   :  { %v203_v7 = vmul.f32 0.0, %v1433_v28 }
  0xba   :  { %1125 = vpow2.f32 %v1037_v18 }
  0xbb   :  { %v204_v21 = vadd.f32 %v203_v7, %v198_v6 }
  0xbd   :  { %v1440_v4 = vpop.permute.xlu1 %76 }
  0xbe   :  { %v209_v63 = vmul.f32 0.0, %v1440_v4 }
  0xc0   :  { %v210_v9 = vadd.f32 %v209_v63, %v204_v21 }
  0xc2   :  { %v1443_v22 = vpop.permute.xlu1 %80 }
  0xc3   :  { %v169_v43 = vmul.f32 0.0, %v1443_v22 }
  0xc4   :  { %v1126_v21 = vpop.eup %1125 }
  0xc5   :  { %v217_v7 = vadd.f32 1.0, %v1126_v21 }
  0xc7   :  { %v129_v29 = vpop.permute.xlu1 %128 }
  0xc8   :  { %v162_v32 = vadd.f32 %v161_v10, %v129_v29  ;;  %v1448_v31 = vadd.f32 %v240_v11, %v129_v29  ;;  %v1450_v19 = vadd.f32 %v351_v12, %v129_v29  ;;  %v1452_v33 = vadd.f32 %v462_v13, %v129_v29 }
  0xc9   :  { %v1454_v24 = vadd.f32 %v573_v14, %v129_v29  ;;  %v1456_v27 = vadd.f32 %v684_v15, %v129_v29  ;;  %v1458_v25 = vadd.f32 %v795_v16, %v129_v29  ;;  %v1460_v26 = vadd.f32 %v906_v17, %v129_v29  ;;  %v1471_v16 = vpop.permute.xlu0 %92 }
  0xca   :  { %1877 = vst [vmem:[#allocation12_spill] sm:$0xff] %v1450_v19  ;;  %1878 = vst [vmem:[#allocation13_spill] sm:$0xff] %v1452_v33  ;;  %v220_v12 = vadd.f32 %v210_v9, %v162_v32  ;;  %v175_v14 = vmul.f32 0.0, %v1462_v23  ;;  %v187_v53 = vmul.f32 0.0, %v1471_v16  ;;  %v1889_v19 = vld [vmem:[#allocation5_spill] sm:$0xff] }
  0xcb   :  { %1879 = vst [vmem:[#allocation14_spill] sm:$0xff] %v1454_v24  ;;  %1880 = vst [vmem:[#allocation15_spill] sm:$0xff] %v1456_v27 }
  0xcc   :  { %1881 = vst [vmem:[#allocation16_spill] sm:$0xff] %v1458_v25  ;;  %1882 = vst [vmem:[#allocation17_spill] sm:$0xff] %v1460_v26  ;;  %v1465_v11 = vpop.permute.xlu1 %144  ;;  %v1038_v42 = vmul.f32 -1.442695, %v220_v12 }
  0xcd   :  { %v170_v13 = vadd.f32 %v169_v43, %v1465_v11  ;;  %v1478_v63 = vpop.permute.xlu0 %104 }
  0xce   :  { %1127 = vpow2.f32 %v1038_v42  ;;  %v205_v43 = vmul.f32 0.0, %v1478_v63 }
  0xcf   :  { %v176_v17 = vadd.f32 %v175_v14, %v170_v13  ;;  %1129 = vrcp.f32 %v217_v7 }
  0xd1   :  { %v1469_v15 = vpop.permute.xlu1 %88  ;;  %v133_v26 = vpop.permute.xlu0 %132 }
  0xd2   :  { %v181_v0 = vmul.f32 0.0, %v1469_v15 }
  0xd4   :  { %v182_v2 = vadd.f32 %v181_v0, %v176_v17 }
  0xd6   :  { %v1475_v6 = vpop.permute.xlu1 %96  ;;  %v188_v10 = vadd.f32 %v187_v53, %v182_v2 }
  0xd7   :  { %v193_v18 = vmul.f32 0.0, %v1475_v6 }
  0xd8   :  { %v1128_v13 = vpop.eup %1127 }
  0xd9   :  { %v194_v32 = vadd.f32 %v193_v18, %v188_v10  ;;  %v224_v0 = vadd.f32 1.0, %v1128_v13  ;;  %v1130_v2 = vpop.eup %1129 }
  0xdb   :  { %v1480_v29 = vpop.permute.xlu1 %100  ;;  %1131 = vrcp.f32 %v224_v0 }
  0xdc   :  { %v199_v9 = vmul.f32 0.0, %v1480_v29 }
  0xde   :  { %v200_v12 = vadd.f32 %v199_v9, %v194_v32 }
  0xe0   :  { %v206_v14 = vadd.f32 %v205_v43, %v200_v12  ;;  %v1484_v42 = vpop.permute.xlu1 %108 }
  0xe1   :  { %v211_v17 = vmul.f32 0.0, %v1484_v42 }
  0xe3   :  { %v212_v21 = vadd.f32 %v211_v17, %v206_v14 }
  0xe5   :  { %v121_v53 = vpop.permute.xlu1 %120  ;;  %v227_v10 = vmul.f32 %v1130_v2, %v212_v21 }
  0xe6   :  { %v163_v7 = vmul.f32 %v1431_v20, %v121_v53  ;;  %v242_v18 = vmul.f32 %v1359_v55, %v121_v53  ;;  %v353_v25 = vmul.f32 %v1362_v56, %v121_v53  ;;  %v464_v32 = vmul.f32 %v1365_v57, %v121_v53 }
  0xe7   :  { %v575_v9 = vmul.f32 %v1370_v59, %v121_v53  ;;  %v686_v43 = vmul.f32 %v1373_v60, %v121_v53  ;;  %v797_v14 = vmul.f32 %v1376_v61, %v121_v53  ;;  %v908_v17 = vmul.f32 %v1379_v62, %v121_v53  ;;  %v1132_v60 = vpop.eup %1131 }
  0xe8   :  { %v164_v12 = vadd.f32 %v163_v7, %v133_v26  ;;  %v1493_v13 = vadd.f32 %v242_v18, %v133_v26  ;;  %v1497_v0 = vadd.f32 %v353_v25, %v133_v26  ;;  %v1499_v20 = vadd.f32 %v464_v32, %v133_v26 }
  0xe9   :  { %v1501_v55 = vadd.f32 %v575_v9, %v133_v26  ;;  %v1503_v56 = vadd.f32 %v686_v43, %v133_v26  ;;  %v1505_v21 = vadd.f32 %v797_v14, %v133_v26  ;;  %v1507_v59 = vadd.f32 %v908_v17, %v133_v26 }
  0xea   :  { %1883 = vst [vmem:[#allocation18_spill] sm:$0xff] %v1497_v0  ;;  %1884 = vst [vmem:[#allocation19_spill] sm:$0xff] %v1499_v20  ;;  %v228_v57 = vadd.f32 %v227_v10, %v164_v12  ;;  %v230_v2 = vsub.f32 1.0, %v1132_v60  ;;  %v232_v61 = vmul.f32 0.0, %v1132_v60 }
  0xeb   :  { %1885 = vst [vmem:[#allocation20_spill] sm:$0xff] %v1501_v55  ;;  %1886 = vst [vmem:[#allocation21_spill] sm:$0xff] %v1503_v56 }
  0xec   :  { %1887 = vst [vmem:[#allocation22_spill] sm:$0xff] %v1505_v21  ;;  %1888 = vst [vmem:[#allocation23_spill] sm:$0xff] %v1507_v59  ;;  %1133 = vtanh.f32 %v228_v57 }
  0xf6   :  { %v1134_v7 = vpop.eup %1133 }
  0xf7   :  { %v231_v18 = vmul.f32 %v1134_v7, %v230_v2 }
  0xf9   :  { %v1509_v62 = vadd.f32 %v232_v61, %v231_v18 }
  0xfb   :  { %v247_v25 = vrot.slane %v1509_v62, %v1426_v5  ;;  %v257_v53 = vrot.slane %v1509_v62, %v1339_v46  ;;  %v267_v26 = vrot.slane %v1509_v62, %v1341_v47  ;;  %v277_v9 = vrot.slane %v1509_v62, %v1343_v48 }
  0xfc   :  { %v287_v57 = vrot.slane %v1509_v62, %v1345_v49  ;;  %v297_v18 = vrot.slane %v1509_v62, %v1347_v50  ;;  %v307_v56 = vrot.slane %v1509_v62, %v1349_v51 }
  0xfd   :  { %v248_v10 = vmul.f32 %v247_v25, %v1321_v35  ;;  %v250_v32 = vmul.f32 %v247_v25, %v1333_v41  ;;  %v258_v14 = vmul.f32 %v257_v53, %v1325_v37  ;;  %v260_v17 = vmul.f32 %v257_v53, %v1337_v45 }
  0xfe   :  { %v268_v7 = vmul.f32 %v267_v26, %v1323_v36  ;;  %v270_v61 = vmul.f32 %v267_v26, %v1367_v58  ;;  %v280_v21 = vmul.f32 %v277_v9, %v1417_v30 }
  0xff   :  { %v249_v43 = vadd.f32 %v248_v10, %v1319_v34  ;;  %v251_v12 = vadd.f32 %v250_v32, %v1390_v8  ;;  %v278_v32 = vmul.f32 %v277_v9, %v1327_v38 }
 0x101   :  { %v259_v60 = vadd.f32 %v258_v14, %v249_v43  ;;  %v261_v2 = vadd.f32 %v260_v17, %v251_v12  ;;  %v288_v43 = vmul.f32 %v287_v57, %v1329_v39  ;;  %v290_v12 = vmul.f32 %v287_v57, %v1423_v1 }
 0x102   :  { %v317_v14 = vrot.slane %v1509_v62, %v1351_v52 }
 0x103   :  { %v269_v59 = vadd.f32 %v268_v7, %v259_v60  ;;  %v271_v10 = vadd.f32 %v270_v61, %v261_v2  ;;  %v298_v60 = vmul.f32 %v297_v18, %v1331_v40  ;;  %v300_v2 = vmul.f32 %v297_v18, %v1384_v3 }
 0x104   :  { %v252_v7 = vmul.f32 %v247_v25, %v1443_v22  ;;  %v318_v33 = vmul.f32 %v317_v14, %v1356_v54  ;;  %v320_v0 = vmul.f32 %v317_v14, %v1440_v4 }
 0x105   :  { %v279_v27 = vadd.f32 %v278_v32, %v269_v59  ;;  %v281_v55 = vadd.f32 %v280_v21, %v271_v10  ;;  %v308_v59 = vmul.f32 %v307_v56, %v1335_v44  ;;  %v310_v21 = vmul.f32 %v307_v56, %v1433_v28 }
 0x107   :  { %v289_v17 = vadd.f32 %v288_v43, %v279_v27  ;;  %v291_v24 = vadd.f32 %v290_v12, %v281_v55  ;;  %v253_v27 = vadd.f32 %v252_v7, %v1465_v11  ;;  %v262_v12 = vmul.f32 %v257_v53, %v1462_v23 }
 0x109   :  { %v299_v61 = vadd.f32 %v298_v60, %v289_v17  ;;  %v301_v20 = vadd.f32 %v300_v2, %v291_v24  ;;  %v263_v17 = vadd.f32 %v262_v12, %v253_v27 }
 0x10b   :  { %v309_v10 = vadd.f32 %v308_v59, %v299_v61  ;;  %v311_v32 = vadd.f32 %v310_v21, %v301_v20  ;;  %v272_v61 = vmul.f32 %v267_v26, %v1469_v15  ;;  %v282_v59 = vmul.f32 %v277_v9, %v1471_v16 }
 0x10c   :  { %v312_v26 = vmul.f32 %v307_v56, %v1478_v63 }
 0x10d   :  { %v319_v55 = vadd.f32 %v318_v33, %v309_v10  ;;  %v321_v43 = vadd.f32 %v320_v0, %v311_v32  ;;  %v273_v20 = vadd.f32 %v272_v61, %v263_v17  ;;  %v292_v33 = vmul.f32 %v287_v57, %v1475_v6 }
 0x10f   :  { %v324_v25 = vadd.f32 %v319_v55, %v1889_v19  ;;  %v331_v24 = vadd.f32 %v321_v43, %v1448_v31  ;;  %v283_v21 = vadd.f32 %v282_v59, %v273_v20  ;;  %v302_v19 = vmul.f32 %v297_v18, %v1480_v29 }
 0x110   :  { %v322_v55 = vmul.f32 %v317_v14, %v1484_v42 }
 0x111   :  { %v1039_v60 = vmul.f32 -1.442695, %v324_v25  ;;  %v1040_v2 = vmul.f32 -1.442695, %v331_v24  ;;  %v293_v7 = vadd.f32 %v292_v33, %v283_v21 }
 0x113   :  { %1135 = vpow2.f32 %v1039_v60  ;;  %v303_v32 = vadd.f32 %v302_v19, %v293_v7 }
 0x114   :  { %1137 = vpow2.f32 %v1040_v2 }
 0x115   :  { %v313_v27 = vadd.f32 %v312_v26, %v303_v32 }
 0x117   :  { %v323_v43 = vadd.f32 %v322_v55, %v313_v27 }
 0x11d   :  { %v1136_v0 = vpop.eup %1135 }
 0x11e   :  { %v1138_v53 = vpop.eup %1137  ;;  %v328_v10 = vadd.f32 1.0, %v1136_v0 }
 0x11f   :  { %v335_v31 = vadd.f32 1.0, %v1138_v53 }
 0x120   :  { %1139 = vrcp.f32 %v328_v10 }
 0x121   :  { %1141 = vrcp.f32 %v335_v31 }
 0x12a   :  { %v1140_v9 = vpop.eup %1139 }
 0x12b   :  { %v1142_v12 = vpop.eup %1141  ;;  %v338_v25 = vmul.f32 %v1140_v9, %v323_v43 }
 0x12c   :  { %v343_v57 = vmul.f32 %v1142_v12, %v1509_v62  ;;  %v341_v17 = vsub.f32 1.0, %v1142_v12 }
 0x12d   :  { %v339_v24 = vadd.f32 %v338_v25, %v1493_v13 }
 0x12f   :  { %1143 = vtanh.f32 %v339_v24 }
 0x139   :  { %v1144_v18 = vpop.eup %1143 }
 0x13a   :  { %v342_v60 = vmul.f32 %v1144_v18, %v341_v17 }
 0x13c   :  { %v1558_v2 = vadd.f32 %v343_v57, %v342_v60 }
 0x13e   :  { %v358_v56 = vrot.slane %v1558_v2, %v1426_v5  ;;  %v368_v14 = vrot.slane %v1558_v2, %v1339_v46  ;;  %v378_v62 = vrot.slane %v1558_v2, %v1341_v47  ;;  %v388_v13 = vrot.slane %v1558_v2, %v1343_v48 }
 0x13f   :  { %v398_v7 = vrot.slane %v1558_v2, %v1345_v49  ;;  %v408_v32 = vrot.slane %v1558_v2, %v1347_v50  ;;  %v418_v9 = vrot.slane %v1558_v2, %v1349_v51  ;;  %v428_v17 = vrot.slane %v1558_v2, %v1351_v52 }
 0x140   :  { %v359_v61 = vmul.f32 %v358_v56, %v1321_v35  ;;  %v361_v20 = vmul.f32 %v358_v56, %v1333_v41  ;;  %v369_v33 = vmul.f32 %v368_v14, %v1325_v37  ;;  %v371_v0 = vmul.f32 %v368_v14, %v1337_v45 }
 0x141   :  { %v379_v19 = vmul.f32 %v378_v62, %v1323_v36  ;;  %v381_v31 = vmul.f32 %v378_v62, %v1367_v58  ;;  %v389_v55 = vmul.f32 %v388_v13, %v1327_v38  ;;  %v391_v43 = vmul.f32 %v388_v13, %v1417_v30 }
 0x142   :  { %v360_v59 = vadd.f32 %v359_v61, %v1319_v34  ;;  %v362_v21 = vadd.f32 %v361_v20, %v1390_v8  ;;  %v399_v57 = vmul.f32 %v398_v7, %v1329_v39  ;;  %v401_v24 = vmul.f32 %v398_v7, %v1423_v1 }
 0x143   :  { %v409_v61 = vmul.f32 %v408_v32, %v1331_v40  ;;  %v411_v20 = vmul.f32 %v408_v32, %v1384_v3 }
 0x144   :  { %v370_v53 = vadd.f32 %v369_v33, %v360_v59  ;;  %v372_v10 = vadd.f32 %v371_v0, %v362_v21  ;;  %v363_v59 = vmul.f32 %v358_v56, %v1443_v22  ;;  %v419_v0 = vmul.f32 %v418_v9, %v1335_v44 }
 0x146   :  { %v380_v26 = vadd.f32 %v379_v19, %v370_v53  ;;  %v382_v27 = vadd.f32 %v381_v31, %v372_v10  ;;  %v421_v53 = vmul.f32 %v418_v9, %v1433_v28  ;;  %v429_v31 = vmul.f32 %v428_v17, %v1356_v54 }
 0x148   :  { %v390_v12 = vadd.f32 %v389_v55, %v380_v26  ;;  %v392_v25 = vadd.f32 %v391_v43, %v382_v27  ;;  %v431_v26 = vmul.f32 %v428_v17, %v1440_v4  ;;  %v364_v27 = vadd.f32 %v363_v59, %v1465_v11 }
 0x149   :  { %v403_v59 = vmul.f32 %v398_v7, %v1475_v6 }
 0x14a   :  { %v400_v18 = vadd.f32 %v399_v57, %v390_v12  ;;  %v402_v60 = vadd.f32 %v401_v24, %v392_v25  ;;  %v373_v12 = vmul.f32 %v368_v14, %v1462_v23  ;;  %v1890_v25 = vld [vmem:[#allocation6_spill] sm:$0xff]  ;;  %v1891_v57 = vld [vmem:[#allocation12_spill] sm:$0xff] }
 0x14c   :  { %v410_v21 = vadd.f32 %v409_v61, %v400_v18  ;;  %v412_v33 = vadd.f32 %v411_v20, %v402_v60  ;;  %v374_v18 = vadd.f32 %v373_v12, %v364_v27  ;;  %v383_v20 = vmul.f32 %v378_v62, %v1469_v15 }
 0x14d   :  { %v423_v62 = vmul.f32 %v418_v9, %v1478_v63 }
 0x14e   :  { %v420_v10 = vadd.f32 %v419_v0, %v410_v21  ;;  %v422_v19 = vadd.f32 %v421_v53, %v412_v33  ;;  %v384_v21 = vadd.f32 %v383_v20, %v374_v18  ;;  %v393_v33 = vmul.f32 %v388_v13, %v1471_v16 }
 0x150   :  { %v430_v55 = vadd.f32 %v429_v31, %v420_v10  ;;  %v432_v43 = vadd.f32 %v431_v26, %v422_v19  ;;  %v394_v0 = vadd.f32 %v393_v33, %v384_v21  ;;  %v413_v31 = vmul.f32 %v408_v32, %v1480_v29 }
 0x152   :  { %v435_v56 = vadd.f32 %v430_v55, %v1890_v25  ;;  %v442_v24 = vadd.f32 %v432_v43, %v1891_v57  ;;  %v404_v10 = vadd.f32 %v403_v59, %v394_v0  ;;  %v433_v43 = vmul.f32 %v428_v17, %v1484_v42  ;;  %v1892_v57 = vld [vmem:[#allocation18_spill] sm:$0xff] }
 0x154   :  { %v1041_v60 = vmul.f32 -1.442695, %v435_v56  ;;  %v1042_v61 = vmul.f32 -1.442695, %v442_v24  ;;  %v414_v27 = vadd.f32 %v413_v31, %v404_v10 }
 0x156   :  { %1145 = vpow2.f32 %v1041_v60  ;;  %v424_v55 = vadd.f32 %v423_v62, %v414_v27 }
 0x157   :  { %1147 = vpow2.f32 %v1042_v61 }
 0x158   :  { %v434_v12 = vadd.f32 %v433_v43, %v424_v55 }
 0x160   :  { %v1146_v53 = vpop.eup %1145 }
 0x161   :  { %v1148_v14 = vpop.eup %1147  ;;  %v439_v19 = vadd.f32 1.0, %v1146_v53 }
 0x162   :  { %v446_v26 = vadd.f32 1.0, %v1148_v14 }
 0x163   :  { %1149 = vrcp.f32 %v439_v19 }
 0x164   :  { %1151 = vrcp.f32 %v446_v26 }
 0x16d   :  { %v1150_v13 = vpop.eup %1149 }
 0x16e   :  { %v1152_v25 = vpop.eup %1151  ;;  %v449_v56 = vmul.f32 %v1150_v13, %v434_v12 }
 0x16f   :  { %v454_v7 = vmul.f32 %v1152_v25, %v1558_v2  ;;  %v452_v18 = vsub.f32 1.0, %v1152_v25 }
 0x170   :  { %v450_v24 = vadd.f32 %v449_v56, %v1892_v57 }
 0x172   :  { %1153 = vtanh.f32 %v450_v24 }
 0x17c   :  { %v1154_v32 = vpop.eup %1153 }
 0x17d   :  { %v453_v60 = vmul.f32 %v1154_v32, %v452_v18 }
 0x17f   :  { %v1607_v61 = vadd.f32 %v454_v7, %v453_v60 }
 0x181   :  { %v469_v9 = vrot.slane %v1607_v61, %v1426_v5  ;;  %v479_v17 = vrot.slane %v1607_v61, %v1339_v46  ;;  %v489_v2 = vrot.slane %v1607_v61, %v1341_v47  ;;  %v499_v33 = vrot.slane %v1607_v61, %v1343_v48 }
 0x182   :  { %v509_v14 = vrot.slane %v1607_v61, %v1345_v49  ;;  %v519_v62 = vrot.slane %v1607_v61, %v1347_v50  ;;  %v529_v25 = vrot.slane %v1607_v61, %v1349_v51  ;;  %v539_v18 = vrot.slane %v1607_v61, %v1351_v52 }
 0x183   :  { %v470_v20 = vmul.f32 %v469_v9, %v1321_v35  ;;  %v472_v21 = vmul.f32 %v469_v9, %v1333_v41  ;;  %v480_v53 = vmul.f32 %v479_v17, %v1325_v37  ;;  %v482_v10 = vmul.f32 %v479_v17, %v1337_v45 }
 0x184   :  { %v490_v26 = vmul.f32 %v489_v2, %v1323_v36  ;;  %v492_v27 = vmul.f32 %v489_v2, %v1367_v58  ;;  %v500_v12 = vmul.f32 %v499_v33, %v1327_v38  ;;  %v502_v13 = vmul.f32 %v499_v33, %v1417_v30 }
 0x185   :  { %v471_v0 = vadd.f32 %v470_v20, %v1319_v34  ;;  %v473_v59 = vadd.f32 %v472_v21, %v1390_v8  ;;  %v510_v57 = vmul.f32 %v509_v14, %v1329_v39  ;;  %v512_v24 = vmul.f32 %v509_v14, %v1423_v1 }
 0x186   :  { %v520_v20 = vmul.f32 %v519_v62, %v1331_v40  ;;  %v522_v21 = vmul.f32 %v519_v62, %v1384_v3 }
 0x187   :  { %v481_v19 = vadd.f32 %v480_v53, %v471_v0  ;;  %v483_v31 = vadd.f32 %v482_v10, %v473_v59  ;;  %v474_v0 = vmul.f32 %v469_v9, %v1443_v22  ;;  %v530_v10 = vmul.f32 %v529_v25, %v1335_v44 }
 0x189   :  { %v491_v55 = vadd.f32 %v490_v26, %v481_v19  ;;  %v493_v43 = vadd.f32 %v492_v27, %v483_v31  ;;  %v532_v19 = vmul.f32 %v529_v25, %v1433_v28  ;;  %v540_v27 = vmul.f32 %v539_v18, %v1356_v54 }
 0x18b   :  { %v501_v56 = vadd.f32 %v500_v12, %v491_v55  ;;  %v503_v7 = vadd.f32 %v502_v13, %v493_v43  ;;  %v542_v55 = vmul.f32 %v539_v18, %v1440_v4  ;;  %v475_v43 = vadd.f32 %v474_v0, %v1465_v11 }
 0x18c   :  { %v514_v0 = vmul.f32 %v509_v14, %v1475_v6 }
 0x18d   :  { %v511_v32 = vadd.f32 %v510_v57, %v501_v56  ;;  %v513_v60 = vadd.f32 %v512_v24, %v503_v7  ;;  %v484_v56 = vmul.f32 %v479_v17, %v1462_v23  ;;  %v1893_v7 = vld [vmem:[#allocation7_spill] sm:$0xff]  ;;  %v1894_v57 = vld [vmem:[#allocation13_spill] sm:$0xff] }
 0x18f   :  { %v521_v59 = vadd.f32 %v520_v20, %v511_v32  ;;  %v523_v53 = vadd.f32 %v522_v21, %v513_v60  ;;  %v485_v32 = vadd.f32 %v484_v56, %v475_v43  ;;  %v494_v21 = vmul.f32 %v489_v2, %v1469_v15 }
 0x190   :  { %v534_v2 = vmul.f32 %v529_v25, %v1478_v63 }
 0x191   :  { %v531_v31 = vadd.f32 %v530_v10, %v521_v59  ;;  %v533_v26 = vadd.f32 %v532_v19, %v523_v53  ;;  %v495_v59 = vadd.f32 %v494_v21, %v485_v32  ;;  %v504_v53 = vmul.f32 %v499_v33, %v1471_v16 }
 0x193   :  { %v541_v12 = vadd.f32 %v540_v27, %v531_v31  ;;  %v543_v13 = vadd.f32 %v542_v55, %v533_v26  ;;  %v505_v10 = vadd.f32 %v504_v53, %v495_v59  ;;  %v524_v27 = vmul.f32 %v519_v62, %v1480_v29 }
 0x195   :  { %v546_v9 = vadd.f32 %v541_v12, %v1893_v7  ;;  %v553_v24 = vadd.f32 %v543_v13, %v1894_v57  ;;  %v515_v31 = vadd.f32 %v514_v0, %v505_v10  ;;  %v544_v13 = vmul.f32 %v539_v18, %v1484_v42  ;;  %v1895_v57 = vld [vmem:[#allocation19_spill] sm:$0xff] }
 0x197   :  { %v1043_v60 = vmul.f32 -1.442695, %v546_v9  ;;  %v1044_v20 = vmul.f32 -1.442695, %v553_v24  ;;  %v525_v43 = vadd.f32 %v524_v27, %v515_v31 }
 0x199   :  { %1155 = vpow2.f32 %v1043_v60  ;;  %v535_v12 = vadd.f32 %v534_v2, %v525_v43 }
 0x19a   :  { %1157 = vpow2.f32 %v1044_v20 }
 0x19b   :  { %v545_v56 = vadd.f32 %v544_v13, %v535_v12 }
 0x1a3   :  { %v1156_v19 = vpop.eup %1155 }
 0x1a4   :  { %v1158_v17 = vpop.eup %1157  ;;  %v550_v26 = vadd.f32 1.0, %v1156_v19 }
 0x1a5   :  { %v557_v55 = vadd.f32 1.0, %v1158_v17 }
 0x1a6   :  { %1159 = vrcp.f32 %v550_v26 }
 0x1a7   :  { %1161 = vrcp.f32 %v557_v55 }
 0x1b0   :  { %v1160_v33 = vpop.eup %1159 }
 0x1b1   :  { %v1162_v7 = vpop.eup %1161  ;;  %v560_v9 = vmul.f32 %v1160_v33, %v545_v56 }
 0x1b2   :  { %v565_v14 = vmul.f32 %v1162_v7, %v1607_v61  ;;  %v563_v32 = vsub.f32 1.0, %v1162_v7 }
 0x1b3   :  { %v561_v24 = vadd.f32 %v560_v9, %v1895_v57 }
 0x1b5   :  { %1163 = vtanh.f32 %v561_v24 }
 0x1bf   :  { %v1164_v62 = vpop.eup %1163 }
 0x1c0   :  { %v564_v60 = vmul.f32 %v1164_v62, %v563_v32 }
 0x1c2   :  { %v1656_v20 = vadd.f32 %v565_v14, %v564_v60 }
 0x1c4   :  { %v580_v25 = vrot.slane %v1656_v20, %v1426_v5  ;;  %v590_v18 = vrot.slane %v1656_v20, %v1339_v46  ;;  %v600_v61 = vrot.slane %v1656_v20, %v1341_v47  ;;  %v610_v53 = vrot.slane %v1656_v20, %v1343_v48 }
 0x1c5   :  { %v620_v17 = vrot.slane %v1656_v20, %v1345_v49  ;;  %v630_v2 = vrot.slane %v1656_v20, %v1347_v50  ;;  %v640_v7 = vrot.slane %v1656_v20, %v1349_v51  ;;  %v650_v32 = vrot.slane %v1656_v20, %v1351_v52 }
 0x1c6   :  { %v581_v21 = vmul.f32 %v580_v25, %v1321_v35  ;;  %v583_v59 = vmul.f32 %v580_v25, %v1333_v41  ;;  %v591_v19 = vmul.f32 %v590_v18, %v1325_v37  ;;  %v593_v31 = vmul.f32 %v590_v18, %v1337_v45 }
 0x1c7   :  { %v601_v55 = vmul.f32 %v600_v61, %v1323_v36  ;;  %v603_v43 = vmul.f32 %v600_v61, %v1367_v58  ;;  %v611_v56 = vmul.f32 %v610_v53, %v1327_v38  ;;  %v613_v33 = vmul.f32 %v610_v53, %v1417_v30 }
 0x1c8   :  { %v582_v10 = vadd.f32 %v581_v21, %v1319_v34  ;;  %v584_v0 = vadd.f32 %v583_v59, %v1390_v8  ;;  %v621_v57 = vmul.f32 %v620_v17, %v1329_v39  ;;  %v623_v24 = vmul.f32 %v620_v17, %v1423_v1 }
 0x1c9   :  { %v631_v21 = vmul.f32 %v630_v2, %v1331_v40  ;;  %v633_v59 = vmul.f32 %v630_v2, %v1384_v3 }
 0x1ca   :  { %v592_v26 = vadd.f32 %v591_v19, %v582_v10  ;;  %v594_v27 = vadd.f32 %v593_v31, %v584_v0  ;;  %v585_v10 = vmul.f32 %v580_v25, %v1443_v22  ;;  %v641_v31 = vmul.f32 %v640_v7, %v1335_v44 }
 0x1cb   :  { %v595_v25 = vmul.f32 %v590_v18, %v1462_v23 }
 0x1cc   :  { %v602_v12 = vadd.f32 %v601_v55, %v592_v26  ;;  %v604_v13 = vadd.f32 %v603_v43, %v594_v27  ;;  %v643_v26 = vmul.f32 %v640_v7, %v1433_v28  ;;  %v651_v43 = vmul.f32 %v650_v32, %v1356_v54 }
 0x1ce   :  { %v612_v9 = vadd.f32 %v611_v56, %v602_v12  ;;  %v614_v14 = vadd.f32 %v613_v33, %v604_v13  ;;  %v653_v12 = vmul.f32 %v650_v32, %v1440_v4  ;;  %v586_v13 = vadd.f32 %v585_v10, %v1465_v11 }
 0x1cf   :  { %v605_v10 = vmul.f32 %v600_v61, %v1469_v15 }
 0x1d0   :  { %v622_v62 = vadd.f32 %v621_v57, %v612_v9  ;;  %v624_v60 = vadd.f32 %v623_v24, %v614_v14  ;;  %v1263_v9 = vmov 33   ;;  %v1896_v14 = vld [vmem:[#allocation8_spill] sm:$0xff]  ;;  %v1897_v24 = vld [vmem:[#allocation14_spill] sm:$0xff] }
 0x1d1   :  { %1122 = vset.pattern.permute.xlu1 %v1263_v9  ;;  %v645_v9 = vmul.f32 %v640_v7, %v1478_v63 }
 0x1d2   :  { %v632_v0 = vadd.f32 %v631_v21, %v622_v62  ;;  %v634_v19 = vadd.f32 %v633_v59, %v624_v60  ;;  %v1205_v60 = vld [vmem:[%s1868_s1] sm:$0xff]  ;;  %v596_v21 = vadd.f32 %v595_v25, %v586_v13  ;;  %v635_v13 = vmul.f32 %v630_v2, %v1480_v29  ;;  %s1265_s1 = smov [#allocation2]  }
 0x1d3   :  { %148 = vperm.xlu1 %1122, %v1205_v60   ;;  %v655_v25 = vmul.f32 %v650_v32, %v1484_v42  ;;  %s1029_s14 = sshll.u32 %s1265_s1, 4  ;;  %s1030_s14 = int_to_ptr.vmem [resolvable:$true] %s1029_s14 }
 0x1d4   :  { %v642_v27 = vadd.f32 %v641_v31, %v632_v0  ;;  %v644_v55 = vadd.f32 %v643_v26, %v634_v19  ;;  %v606_v19 = vadd.f32 %v605_v10, %v596_v21  ;;  %v615_v31 = vmul.f32 %v610_v53, %v1471_v16  ;;  %v1898_v21 = vld [vmem:[#allocation20_spill] sm:$0xff]  ;;  %s1206_s15 = scalar_lea.vmem %s1030_s14, 16  ;;  %s1210_s16 = scalar_lea.vmem %s1030_s14, 32 }
 0x1d5   :  { %v625_v26 = vmul.f32 %v620_v17, %v1475_v6  ;;  %p1207_p0 = scmp.ne.s32.totalorder %s1030_s14, %s1206_s15  ;;  %p1211_p1 = scmp.lt.s32.totalorder %s1030_s14, %s1030_s14 }
 0x1d6   :  { %v652_v56 = vadd.f32 %v651_v43, %v642_v27  ;;  %v654_v33 = vadd.f32 %v653_v12, %v644_v55  ;;  %v616_v18 = vadd.f32 %v615_v31, %v606_v19  ;;  %v1264_v43 = vmov 34   ;;  %p1212_p2 = scmp.lt.s32.totalorder %s1210_s16, %s1206_s15 }
 0x1d7   :  { %1123 = vset.pattern.permute.xlu1 %v1264_v43  ;;  %1124 = vset.pattern.permute.xlu0 %v1264_v43 }
 0x1d8   :  { %v657_v57 = vadd.f32 %v652_v56, %v1896_v14  ;;  %v664_v62 = vadd.f32 %v654_v33, %v1897_v24  ;;  %v626_v55 = vadd.f32 %v625_v26, %v616_v18  ;;  %152 = vperm.xlu1 %1123, %v1205_v60   ;;  %p1213_p3 = por %p1212_p2, %p1211_p1 }
 0x1da   :  { %v1045_v59 = vmul.f32 -1.442695, %v657_v57  ;;  %v1046_v0 = vmul.f32 -1.442695, %v664_v62  ;;  %v636_v61 = vadd.f32 %v635_v13, %v626_v55  ;;  %p1214_p4 = pnand %p1213_p3, %p1207_p0 }
 0x1dc   :  { %1165 = vpow2.f32 %v1045_v59  ;;  %v646_v53 = vadd.f32 %v645_v9, %v636_v61 }
 0x1dd   :  { %1167 = vpow2.f32 %v1046_v0 }
 0x1de   :  { %v656_v17 = vadd.f32 %v655_v25, %v646_v53 }
 0x1e6   :  { %v1166_v27 = vpop.eup %1165 }
 0x1e7   :  { %v1168_v12 = vpop.eup %1167  ;;  %v661_v56 = vadd.f32 1.0, %v1166_v27 }
 0x1e8   :  { %v668_v33 = vadd.f32 1.0, %v1168_v12 }
 0x1e9   :  { %1169 = vrcp.f32 %v661_v56 }
 0x1ea   :  { %1171 = vrcp.f32 %v668_v33 }
 0x1f3   :  { %v1170_v14 = vpop.eup %1169 }
 0x1f4   :  { %v1172_v57 = vpop.eup %1171  ;;  %v671_v24 = vmul.f32 %v1170_v14, %v656_v17 }
 0x1f5   :  { %v676_v62 = vmul.f32 %v1172_v57, %v1656_v20  ;;  %v674_v60 = vsub.f32 1.0, %v1172_v57 }
 0x1f6   :  { %v672_v59 = vadd.f32 %v671_v24, %v1898_v21 }
 0x1f8   :  { %1173 = vtanh.f32 %v672_v59 }
 0x202   :  { %v1174_v2 = vpop.eup %1173 }
 0x203   :  { %v675_v0 = vmul.f32 %v1174_v2, %v674_v60 }
 0x205   :  { %v1708_v10 = vadd.f32 %v676_v62, %v675_v0 }
 0x207   :  { %v691_v7 = vrot.slane %v1708_v10, %v1426_v5  ;;  %v701_v32 = vrot.slane %v1708_v10, %v1339_v46  ;;  %v711_v20 = vrot.slane %v1708_v10, %v1341_v47  ;;  %v721_v18 = vrot.slane %v1708_v10, %v1343_v48 }
 0x208   :  { %v731_v12 = vrot.slane %v1708_v10, %v1345_v49  ;;  %v741_v9 = vrot.slane %v1708_v10, %v1347_v50  ;;  %v751_v57 = vrot.slane %v1708_v10, %v1349_v51  ;;  %v761_v60 = vrot.slane %v1708_v10, %v1351_v52 }
 0x209   :  { %v692_v19 = vmul.f32 %v691_v7, %v1321_v35  ;;  %v694_v31 = vmul.f32 %v691_v7, %v1333_v41  ;;  %v702_v55 = vmul.f32 %v701_v32, %v1325_v37  ;;  %v704_v43 = vmul.f32 %v701_v32, %v1337_v45 }
 0x20a   :  { %v712_v33 = vmul.f32 %v711_v20, %v1323_v36  ;;  %v714_v61 = vmul.f32 %v711_v20, %v1367_v58  ;;  %v722_v17 = vmul.f32 %v721_v18, %v1327_v38  ;;  %v724_v14 = vmul.f32 %v721_v18, %v1417_v30 }
 0x20b   :  { %v693_v26 = vadd.f32 %v692_v19, %v1319_v34  ;;  %v695_v27 = vadd.f32 %v694_v31, %v1390_v8  ;;  %v732_v21 = vmul.f32 %v731_v12, %v1329_v39  ;;  %v734_v59 = vmul.f32 %v731_v12, %v1423_v1 }
 0x20c   :  { %v742_v19 = vmul.f32 %v741_v9, %v1331_v40  ;;  %v744_v31 = vmul.f32 %v741_v9, %v1384_v3 }
 0x20d   :  { %v703_v56 = vadd.f32 %v702_v55, %v693_v26  ;;  %v705_v13 = vadd.f32 %v704_v43, %v695_v27  ;;  %v696_v26 = vmul.f32 %v691_v7, %v1443_v22  ;;  %v752_v43 = vmul.f32 %v751_v57, %v1335_v44 }
 0x20f   :  { %v713_v53 = vadd.f32 %v712_v33, %v703_v56  ;;  %v715_v25 = vadd.f32 %v714_v61, %v705_v13  ;;  %v754_v56 = vmul.f32 %v751_v57, %v1433_v28  ;;  %v762_v61 = vmul.f32 %v761_v60, %v1356_v54 }
 0x211   :  { %v723_v24 = vadd.f32 %v722_v17, %v713_v53  ;;  %v725_v62 = vadd.f32 %v724_v14, %v715_v25  ;;  %v764_v53 = vmul.f32 %v761_v60, %v1440_v4  ;;  %v697_v25 = vadd.f32 %v696_v26, %v1465_v11 }
 0x212   :  { %v736_v26 = vmul.f32 %v731_v12, %v1475_v6 }
 0x213   :  { %v733_v2 = vadd.f32 %v732_v21, %v723_v24  ;;  %v735_v0 = vadd.f32 %v734_v59, %v725_v62  ;;  %v706_v24 = vmul.f32 %v701_v32, %v1462_v23  ;;  %v1899_v62 = vld [vmem:[#allocation9_spill] sm:$0xff]  ;;  %v1900_v21 = vld [vmem:[#allocation15_spill] sm:$0xff] }
 0x215   :  { %v743_v27 = vadd.f32 %v742_v19, %v733_v2  ;;  %v745_v55 = vadd.f32 %v744_v31, %v735_v0  ;;  %v707_v2 = vadd.f32 %v706_v24, %v697_v25  ;;  %v716_v31 = vmul.f32 %v711_v20, %v1469_v15 }
 0x216   :  { %v756_v20 = vmul.f32 %v751_v57, %v1478_v63 }
 0x217   :  { %v753_v13 = vadd.f32 %v752_v43, %v743_v27  ;;  %v755_v33 = vadd.f32 %v754_v56, %v745_v55  ;;  %v717_v27 = vadd.f32 %v716_v31, %v707_v2  ;;  %v726_v55 = vmul.f32 %v721_v18, %v1471_v16 }
 0x219   :  { %v763_v17 = vadd.f32 %v762_v61, %v753_v13  ;;  %v765_v14 = vadd.f32 %v764_v53, %v755_v33  ;;  %v727_v43 = vadd.f32 %v726_v55, %v717_v27  ;;  %v746_v61 = vmul.f32 %v741_v9, %v1480_v29 }
 0x21b   :  { %v768_v7 = vadd.f32 %v763_v17, %v1899_v62  ;;  %v775_v59 = vadd.f32 %v765_v14, %v1900_v21  ;;  %v737_v13 = vadd.f32 %v736_v26, %v727_v43  ;;  %v766_v14 = vmul.f32 %v761_v60, %v1484_v42  ;;  %v1901_v21 = vld [vmem:[#allocation21_spill] sm:$0xff] }
 0x21d   :  { %v1047_v0 = vmul.f32 -1.442695, %v768_v7  ;;  %v1048_v19 = vmul.f32 -1.442695, %v775_v59  ;;  %v747_v25 = vadd.f32 %v746_v61, %v737_v13 }
 0x21f   :  { %1175 = vpow2.f32 %v1047_v0  ;;  %v757_v17 = vadd.f32 %v756_v20, %v747_v25 }
 0x220   :  { %1177 = vpow2.f32 %v1048_v19 }
 0x221   :  { %v767_v24 = vadd.f32 %v766_v14, %v757_v17 }
 0x229   :  { %v1176_v56 = vpop.eup %1175 }
 0x22a   :  { %v1178_v32 = vpop.eup %1177  ;;  %v772_v33 = vadd.f32 1.0, %v1176_v56 }
 0x22b   :  { %v779_v53 = vadd.f32 1.0, %v1178_v32 }
 0x22c   :  { %1179 = vrcp.f32 %v772_v33 }
 0x22d   :  { %1181 = vrcp.f32 %v779_v53 }
 0x236   :  { %v1180_v18 = vpop.eup %1179 }
 0x237   :  { %v1182_v62 = vpop.eup %1181  ;;  %v782_v7 = vmul.f32 %v1180_v18, %v767_v24 }
 0x238   :  { %v787_v12 = vmul.f32 %v1182_v62, %v1708_v10  ;;  %v785_v2 = vsub.f32 1.0, %v1182_v62 }
 0x239   :  { %v783_v59 = vadd.f32 %v782_v7, %v1901_v21 }
 0x23b   :  { %1183 = vtanh.f32 %v783_v59 }
 0x245   :  { %v1184_v9 = vpop.eup %1183 }
 0x246   :  { %v786_v0 = vmul.f32 %v1184_v9, %v785_v2 }
 0x248   :  { %v1757_v19 = vadd.f32 %v787_v12, %v786_v0 }
 0x24a   :  { %v802_v57 = vrot.slane %v1757_v19, %v1426_v5  ;;  %v812_v60 = vrot.slane %v1757_v19, %v1339_v46  ;;  %v822_v10 = vrot.slane %v1757_v19, %v1341_v47  ;;  %v832_v55 = vrot.slane %v1757_v19, %v1343_v48 }
 0x24b   :  { %v842_v32 = vrot.slane %v1757_v19, %v1345_v49  ;;  %v852_v20 = vrot.slane %v1757_v19, %v1347_v50  ;;  %v862_v62 = vrot.slane %v1757_v19, %v1349_v51  ;;  %v872_v2 = vrot.slane %v1757_v19, %v1351_v52 }
 0x24c   :  { %v803_v31 = vmul.f32 %v802_v57, %v1321_v35  ;;  %v805_v27 = vmul.f32 %v802_v57, %v1333_v41  ;;  %v813_v56 = vmul.f32 %v812_v60, %v1325_v37  ;;  %v815_v13 = vmul.f32 %v812_v60, %v1337_v45 }
 0x24d   :  { %v823_v53 = vmul.f32 %v822_v10, %v1323_v36  ;;  %v825_v25 = vmul.f32 %v822_v10, %v1367_v58  ;;  %v833_v24 = vmul.f32 %v832_v55, %v1327_v38  ;;  %v835_v18 = vmul.f32 %v832_v55, %v1417_v30 }
 0x24e   :  { %v804_v43 = vadd.f32 %v803_v31, %v1319_v34  ;;  %v806_v26 = vadd.f32 %v805_v27, %v1390_v8  ;;  %v843_v21 = vmul.f32 %v842_v32, %v1329_v39  ;;  %v845_v59 = vmul.f32 %v842_v32, %v1423_v1 }
 0x24f   :  { %v853_v31 = vmul.f32 %v852_v20, %v1331_v40  ;;  %v855_v27 = vmul.f32 %v852_v20, %v1384_v3 }
 0x250   :  { %v814_v33 = vadd.f32 %v813_v56, %v804_v43  ;;  %v816_v61 = vadd.f32 %v815_v13, %v806_v26  ;;  %v807_v43 = vmul.f32 %v802_v57, %v1443_v22  ;;  %v863_v13 = vmul.f32 %v862_v62, %v1335_v44 }
 0x252   :  { %v824_v17 = vadd.f32 %v823_v53, %v814_v33  ;;  %v826_v14 = vadd.f32 %v825_v25, %v816_v61  ;;  %v865_v33 = vmul.f32 %v862_v62, %v1433_v28  ;;  %v873_v25 = vmul.f32 %v872_v2, %v1356_v54 }
 0x254   :  { %v834_v7 = vadd.f32 %v833_v24, %v824_v17  ;;  %v836_v12 = vadd.f32 %v835_v18, %v826_v14  ;;  %v875_v17 = vmul.f32 %v872_v2, %v1440_v4  ;;  %v808_v14 = vadd.f32 %v807_v43, %v1465_v11 }
 0x255   :  { %v847_v43 = vmul.f32 %v842_v32, %v1475_v6 }
 0x256   :  { %v844_v9 = vadd.f32 %v843_v21, %v834_v7  ;;  %v846_v0 = vadd.f32 %v845_v59, %v836_v12  ;;  %v817_v7 = vmul.f32 %v812_v60, %v1462_v23  ;;  %v1902_v12 = vld [vmem:[#allocation10_spill] sm:$0xff]  ;;  %v1903_v21 = vld [vmem:[#allocation16_spill] sm:$0xff] }
 0x258   :  { %v854_v26 = vadd.f32 %v853_v31, %v844_v9  ;;  %v856_v56 = vadd.f32 %v855_v27, %v846_v0  ;;  %v818_v9 = vadd.f32 %v817_v7, %v808_v14  ;;  %v827_v27 = vmul.f32 %v822_v10, %v1469_v15 }
 0x259   :  { %v867_v10 = vmul.f32 %v862_v62, %v1478_v63 }
 0x25a   :  { %v864_v61 = vadd.f32 %v863_v13, %v854_v26  ;;  %v866_v53 = vadd.f32 %v865_v33, %v856_v56  ;;  %v828_v26 = vadd.f32 %v827_v27, %v818_v9  ;;  %v837_v56 = vmul.f32 %v832_v55, %v1471_v16 }
 0x25c   :  { %v874_v24 = vadd.f32 %v873_v25, %v864_v61  ;;  %v876_v18 = vadd.f32 %v875_v17, %v866_v53  ;;  %v838_v13 = vadd.f32 %v837_v56, %v828_v26  ;;  %v857_v25 = vmul.f32 %v852_v20, %v1480_v29 }
 0x25e   :  { %v879_v57 = vadd.f32 %v874_v24, %v1902_v12  ;;  %v886_v59 = vadd.f32 %v876_v18, %v1903_v21  ;;  %v848_v61 = vadd.f32 %v847_v43, %v838_v13  ;;  %v877_v18 = vmul.f32 %v872_v2, %v1484_v42  ;;  %v1904_v21 = vld [vmem:[#allocation22_spill] sm:$0xff] }
 0x260   :  { %v1049_v0 = vmul.f32 -1.442695, %v879_v57  ;;  %v1050_v31 = vmul.f32 -1.442695, %v886_v59  ;;  %v858_v14 = vadd.f32 %v857_v25, %v848_v61 }
 0x262   :  { %1185 = vpow2.f32 %v1049_v0  ;;  %v868_v24 = vadd.f32 %v867_v10, %v858_v14 }
 0x263   :  { %1187 = vpow2.f32 %v1050_v31 }
 0x264   :  { %v878_v7 = vadd.f32 %v877_v18, %v868_v24 }
 0x26c   :  { %v1186_v33 = vpop.eup %1185 }
 0x26d   :  { %v1188_v60 = vpop.eup %1187  ;;  %v883_v53 = vadd.f32 1.0, %v1186_v33 }
 0x26e   :  { %v890_v17 = vadd.f32 1.0, %v1188_v60 }
 0x26f   :  { %1189 = vrcp.f32 %v883_v53 }
 0x270   :  { %1191 = vrcp.f32 %v890_v17 }
 0x279   :  { %v1190_v55 = vpop.eup %1189 }
 0x27a   :  { %v1192_v12 = vpop.eup %1191  ;;  %v893_v57 = vmul.f32 %v1190_v55, %v878_v7 }
 0x27b   :  { %v898_v32 = vmul.f32 %v1192_v12, %v1757_v19  ;;  %v896_v9 = vsub.f32 1.0, %v1192_v12 }
 0x27c   :  { %v894_v59 = vadd.f32 %v893_v57, %v1904_v21  ;;  %v1905_v57 = vld [vmem:[#allocation11_spill] sm:$0xff] }
 0x27e   :  { %1193 = vtanh.f32 %v894_v59 }
 0x288   :  { %v1194_v20 = vpop.eup %1193 }
 0x289   :  { %v897_v0 = vmul.f32 %v1194_v20, %v896_v9 }
 0x28b   :  { %v1806_v31 = vadd.f32 %v898_v32, %v897_v0  ;;  %v1906_v32 = vld [vmem:[#allocation17_spill] sm:$0xff] }
 0x28d   :  { %v913_v62 = vrot.slane %v1806_v31, %v1426_v5  ;;  %v923_v2 = vrot.slane %v1806_v31, %v1339_v46  ;;  %v933_v19 = vrot.slane %v1806_v31, %v1341_v47  ;;  %v943_v56 = vrot.slane %v1806_v31, %v1343_v48 }
 0x28e   :  { %v953_v46 = vrot.slane %v1806_v31, %v1345_v49  ;;  %v963_v48 = vrot.slane %v1806_v31, %v1347_v50 }
 0x28f   :  { %v914_v27 = vmul.f32 %v913_v62, %v1321_v35  ;;  %v916_v26 = vmul.f32 %v913_v62, %v1333_v41  ;;  %v924_v33 = vmul.f32 %v923_v2, %v1325_v37  ;;  %v926_v5 = vmul.f32 %v923_v2, %v1337_v45 }
 0x290   :  { %v934_v41 = vmul.f32 %v933_v19, %v1323_v36  ;;  %v936_v47 = vmul.f32 %v933_v19, %v1367_v58  ;;  %v946_v37 = vmul.f32 %v943_v56, %v1417_v30  ;;  %v973_v45 = vrot.slane %v1806_v31, %v1349_v51 }
 0x291   :  { %v915_v13 = vadd.f32 %v914_v27, %v1319_v34  ;;  %v917_v43 = vadd.f32 %v916_v26, %v1390_v8  ;;  %v944_v8 = vmul.f32 %v943_v56, %v1327_v38  ;;  %v954_v25 = vmul.f32 %v953_v46, %v1329_v39 }
 0x292   :  { %v956_v36 = vmul.f32 %v953_v46, %v1423_v1  ;;  %v983_v58 = vrot.slane %v1806_v31, %v1351_v52  ;;  %v964_v14 = vmul.f32 %v963_v48, %v1331_v40  ;;  %v966_v38 = vmul.f32 %v963_v48, %v1384_v3 }
 0x293   :  { %v925_v35 = vadd.f32 %v924_v33, %v915_v13  ;;  %v927_v61 = vadd.f32 %v926_v5, %v917_v43  ;;  %v918_v30 = vmul.f32 %v913_v62, %v1443_v22  ;;  %v974_v51 = vmul.f32 %v973_v45, %v1335_v44 }
 0x294   :  { %v976_v18 = vmul.f32 %v973_v45, %v1433_v28  ;;  %v984_v1 = vmul.f32 %v983_v58, %v1356_v54  ;;  %v986_v52 = vmul.f32 %v983_v58, %v1440_v4  ;;  %v928_v3 = vmul.f32 %v923_v2, %v1462_v23 }
 0x295   :  { %v935_v60 = vadd.f32 %v934_v41, %v925_v35  ;;  %v937_v34 = vadd.f32 %v936_v47, %v927_v61  ;;  %v919_v55 = vadd.f32 %v918_v30, %v1465_v11  ;;  %v938_v28 = vmul.f32 %v933_v19, %v1469_v15  ;;  %v149_v47 = vpop.permute.xlu1 %148 }
 0x296   :  { %v948_v4 = vmul.f32 %v943_v56, %v1471_v16  ;;  %v958_v11 = vmul.f32 %v953_v46, %v1475_v6  ;;  %v968_v27 = vmul.f32 %v963_v48, %v1480_v29  ;;  %v978_v15 = vmul.f32 %v973_v45, %v1478_v63  ;;  %v1907_v46 = vld [vmem:[#allocation23_spill] sm:$0xff] }
 0x297   :  { %v945_v53 = vadd.f32 %v944_v8, %v935_v60  ;;  %v947_v49 = vadd.f32 %v946_v37, %v937_v34  ;;  %v929_v59 = vadd.f32 %v928_v3, %v919_v55  ;;  %v988_v43 = vmul.f32 %v983_v58, %v1484_v42 }
 0x299   :  { %v955_v17 = vadd.f32 %v954_v25, %v945_v53  ;;  %v957_v50 = vadd.f32 %v956_v36, %v947_v49  ;;  %v939_v54 = vadd.f32 %v938_v28, %v929_v59  ;;  %v153_v53 = vpop.permute.xlu1 %152 }
 0x29b   :  { %v965_v10 = vadd.f32 %v964_v14, %v955_v17  ;;  %v967_v24 = vadd.f32 %v966_v38, %v957_v50  ;;  %v949_v20 = vadd.f32 %v948_v4, %v939_v54 }
 0x29d   :  { %v975_v39 = vadd.f32 %v974_v51, %v965_v10  ;;  %v977_v7 = vadd.f32 %v976_v18, %v967_v24  ;;  %v959_v62 = vadd.f32 %v958_v11, %v949_v20 }
 0x29f   :  { %v985_v12 = vadd.f32 %v984_v1, %v975_v39  ;;  %v987_v40 = vadd.f32 %v986_v52, %v977_v7  ;;  %v969_v13 = vadd.f32 %v968_v27, %v959_v62 }
 0x2a1   :  { %v990_v22 = vadd.f32 %v985_v12, %v1905_v57  ;;  %v997_v21 = vadd.f32 %v987_v40, %v1906_v32  ;;  %v979_v19 = vadd.f32 %v978_v15, %v969_v13 }
 0x2a3   :  { %v1051_v44 = vmul.f32 -1.442695, %v990_v22  ;;  %v1052_v9 = vmul.f32 -1.442695, %v997_v21  ;;  %v989_v33 = vadd.f32 %v988_v43, %v979_v19 }
 0x2a5   :  { %1195 = vpow2.f32 %v1051_v44 }
 0x2a6   :  { %1197 = vpow2.f32 %v1052_v9 }
 0x2af   :  { %v1196_v0 = vpop.eup %1195 }
 0x2b0   :  { %v1198_v23 = vpop.eup %1197  ;;  %v994_v2 = vadd.f32 1.0, %v1196_v0 }
 0x2b1   :  { %v1001_v26 = vadd.f32 1.0, %v1198_v23 }
 0x2b2   :  { %1199 = vrcp.f32 %v994_v2 }
 0x2b3   :  { %1201 = vrcp.f32 %v1001_v26 }
 0x2bc   :  { %v1200_v16 = vpop.eup %1199 }
 0x2bd   :  { %v1202_v56 = vpop.eup %1201  ;;  %v1004_v5 = vmul.f32 %v1200_v16, %v989_v33 }
 0x2be   :  { %v1009_v6 = vmul.f32 %v1202_v56, %v1806_v31  ;;  %v1007_v61 = vsub.f32 1.0, %v1202_v56 }
 0x2bf   :  { %v1005_v35 = vadd.f32 %v1004_v5, %v1907_v46 }
 0x2c1   :  { %1203 = vtanh.f32 %v1005_v35 }
 0x2cb   :  { %v1204_v29 = vpop.eup %1203 }
 0x2cc   :  { %v1008_v41 = vmul.f32 %v1204_v29, %v1007_v61 }
 0x2ce   :  { %v1010_v48 = vadd.f32 %v1009_v6, %v1008_v41 }
 0x2d0   :  { %v1011_v60 = vmul.f32 %v1010_v48, %v149_v47 }
 0x2d2   :  { %v1013_v63 = vsel %vm1012_vm0, %v1011_v60, 0.0 }
 0x2d3   :  { %v1014_v34 = vrot.slane %v1013_v63, 4 }
 0x2d5   :  { %v1015_v8 = vadd.f32 %v1014_v34, %v1013_v63 }
 0x2d7   :  { %v1016_v42 = vrot.slane %v1015_v8, 2 }
 0x2d9   :  { %v1017_v37 = vadd.f32 %v1016_v42, %v1015_v8 }
 0x2db   :  { %v1018_v45 = vrot.slane %v1017_v37, 1 }
 0x2dd   :  { %v1019_v31 = vadd.f32 %v1018_v45, %v1017_v37 }
 0x2df   :  { %v1020_v49 = vadd.f32 %v1019_v31, %v153_v53 }
 0x2e1   :  { %1022 = vst.msk [vmem:[#allocation2] sm:$0x1] %vm1021_vm1, %v1020_v49 }
 0x2e2   :  { %1217 = shalt.err (!%p1214_p4)
}
 0x2e3   :  { %s1218_s19 = scalar_lea.hbm %s1869_s2, 16 }
 0x2e4   :  { %p1219_p5 = scmp.ne.s32.totalorder %s1869_s2, %s1218_s19  ;;  %p1222_p6 = scmp.lt.u32.totalorder %s1218_s19, %s1869_s2 }
 0x2e6   :  { %p1224_p7 = pnand %p1222_p6, %p1219_p5 }
 0x2e8   :  { %1227 = shalt.err (!%p1224_p7)
}
 0x2e9   :  { %1032 = dma.vmem_to_hbm [thread:$0]  %s1030_s14, 16, %s1869_s2, [#allocation3]  }
 0x2ea   :  { %1228 = dma.done.wait [#allocation3], 16  }
 0x2eb   :  { %1229 = vsyncadd [#allocation3], 4294967280 }
 0x2ec   :  { %1036 = vsyncpa [#allocation3], 1 }

</bundles_post_ra>
